<compile_context>
chip_gen: v5e
topology: v5e:2x2
jax: 0.10.0
libtpu: 0.0.40
codegen_flags: <defaults>
</compile_context>

<pallas_src>
import jax
import jax.numpy as jnp
import numpy as np
from jax import lax
from jax.experimental import pallas as pl
from jax.experimental.pallas import tpu as pltpu


def _quick_gelu(x):
    # QuickGELU: x * sigmoid(1.702 * x)
    return x * jax.nn.sigmoid(1.702 * x)


def preact_block_kernel(x_ref, s1_ref, b1_ref, w1_ref, b2_ref, w2_ref,
                        wsc_ref, kf_ref, kl_ref, out_ref):
    """NB images per grid step, lane-dense (MB, W*C) layout, MB = NB*H.

    x_ref   : (MB, W*Cin)          activations, channels folded into lanes
    s1/b1   : (1, W*Cin)           BN1 folded scale / bias (tiled over W)
    w1_ref  : (3, W*Cin, W*Cout)   conv1 banded weights (BN2 scale pre-folded)
    b2_ref  : (1, W*Cout)          BN2 folded bias (tiled over W)
    w2_ref  : (3, W*Cout, W*Cout)  conv2 banded weights
    wsc_ref : (W*Cin, W*Cout)      1x1 shortcut conv as block-diagonal matmul
    kf/kl   : (MB, 1)              0/1 masks: 0 at each image's first/last row
    out_ref : (MB, W*Cout)         lane-dense output slab
    """
    mb = x_ref.shape[0]

    # ---- QuickGELU(BN1(x)) --- f32 elementwise (safe on v5e) ----------------
    h1 = _quick_gelu(x_ref[...] * s1_ref[...] + b1_ref[...])
    h1b = h1.astype(jnp.bfloat16)

    keep_first = kf_ref[...]   # zero on rows with h == 0 within each image
    keep_last = kl_ref[...]    # zero on rows with h == H-1 within each image

    def conv3x3(act_b, w_ref_):
        # One full-M matmul per kernel row dh.  The +/-1 row shift is applied
        # to the f32 results via XLU sublane rolls + hoisted border masks
        # (no extra MXU passes, no padded-scratch round trips).
        p0 = jnp.dot(act_b, w_ref_[0], preferred_element_type=jnp.float32)
        p1 = jnp.dot(act_b, w_ref_[1], preferred_element_type=jnp.float32)
        p2 = jnp.dot(act_b, w_ref_[2], preferred_element_type=jnp.float32)
        down = pltpu.roll(p0, shift=1, axis=0) * keep_first       # row m <- p0[m-1]
        up = pltpu.roll(p2, shift=mb - 1, axis=0) * keep_last     # row m <- p2[m+1]
        return p1 + down + up

    # ---- shortcut = 1x1 conv on act(bn1(x)) (block-diagonal matmul) ---------
    shortcut = jnp.dot(h1b, wsc_ref[...], preferred_element_type=jnp.float32)

    # ---- conv1 (3x3, pad 1, stride 1); BN2 scale already folded into w1 -----
    acc1 = conv3x3(h1b, w1_ref)                                   # (MB, W*Cout) f32

    # ---- QuickGELU(conv1 + BN2 bias) -----------------------------------------
    h2b = _quick_gelu(acc1 + b2_ref[...]).astype(jnp.bfloat16)

    # ---- conv2 + residual add (shortcut folded into the accumulator) --------
    out_ref[...] = shortcut + conv3x3(h2b, w2_ref)


def _build_banded(w_hwio, W):
    """(3,3,Ci,Co) HWIO weights -> (3, W*Ci, W*Co) banded matmul weights.

    mats[dh][(w+dw-1)*Ci + c, w*Co + o] = w_hwio[dh, dw, c, o]  (zero outside W)
    so that  out_row = sum_dh shift_dh(act_row) @ mats[dh]  implements the
    SAME-padded 3x3 conv along the W/channel (lane) axis.
    """
    w = np.asarray(w_hwio, dtype=np.float32)
    kh, kw, ci, co = w.shape
    mats = []
    for dh in range(kh):
        m = np.zeros((W * ci, W * co), np.float32)
        for dw in range(kw):
            m += np.kron(np.eye(W, W, 1 - dw, dtype=np.float32), w[dh, dw])
        mats.append(m)
    return jnp.asarray(np.stack(mats, axis=0))


def _choose_batch_block(N, H, target_m=128):
    """Largest NB with N % NB == 0 and NB*H <= target_m, preferring grid >= 2
    (so dimension_semantics=("parallel",) keeps both v7x TensorCores busy)."""
    divs = [d for d in range(1, N + 1) if N % d == 0 and d * H <= target_m]
    if not divs:
        return 1
    multi = [d for d in divs if N // d >= 2]
    return max(multi) if multi else max(divs)


def preact_block_pallas(x_nhwc, params, nb=None):
    """x_nhwc: (N, H, W, Cin) float32.  Returns (N, H, W, Cout) float32."""
    N, H, W, Cin = x_nhwc.shape
    Cout = params["w1"].shape[-1]
    WCin, WCout = W * Cin, W * Cout

    if nb is None:
        nb = _choose_batch_block(N, H)
    assert N % nb == 0, "batch must be divisible by the per-step image count"
    G = N // nb
    MB = nb * H                       # matmul M dimension per grid step

    # Lane-dense presentation: channels folded into lanes, NB images stacked
    # along the sublane/M axis.
    x2d = x_nhwc.reshape(G, MB, WCin)

    s1 = jnp.tile(params["bn1_scale"], W).reshape(1, WCin)
    b1 = jnp.tile(params["bn1_bias"], W).reshape(1, WCin)
    b2 = jnp.tile(params["bn2_bias"], W).reshape(1, WCout)

    # Fold BN2 per-channel scale into conv1 output channels BEFORE bf16
    # quantization (removes a full (MB, W*Cout) f32 VPU multiply per step).
    w1_folded = (np.asarray(params["w1"], np.float32)
                 * np.asarray(params["bn2_scale"], np.float32)[None, None, None, :])
    w1b = _build_banded(w1_folded, W).astype(jnp.bfloat16)        # (3, WCin, WCout)
    w2b = _build_banded(params["w2"], W).astype(jnp.bfloat16)     # (3, WCout, WCout)
    wscb = jnp.asarray(
        np.kron(np.eye(W, dtype=np.float32),
                np.asarray(params["w_sc"], np.float32))).astype(jnp.bfloat16)

    # Grid-invariant border-row masks (hoisted out of the kernel body).
    rows = np.arange(MB)
    keep_first = jnp.asarray((rows % H != 0).astype(np.float32).reshape(MB, 1))
    keep_last = jnp.asarray((rows % H != H - 1).astype(np.float32).reshape(MB, 1))

    grid_spec = pltpu.PrefetchScalarGridSpec(
        num_scalar_prefetch=0,
        grid=(G,),
        in_specs=[
            pl.BlockSpec((None, MB, WCin), lambda g: (g, 0, 0)),     # x (lane-dense)
            pl.BlockSpec((1, WCin), lambda g: (0, 0)),               # bn1 scale
            pl.BlockSpec((1, WCin), lambda g: (0, 0)),               # bn1 bias
            pl.BlockSpec((3, WCin, WCout), lambda g: (0, 0, 0)),     # conv1 banded w
            pl.BlockSpec((1, WCout), lambda g: (0, 0)),              # bn2 bias
            pl.BlockSpec((3, WCout, WCout), lambda g: (0, 0, 0)),    # conv2 banded w
            pl.BlockSpec((WCin, WCout), lambda g: (0, 0)),           # shortcut w
            pl.BlockSpec((MB, 1), lambda g: (0, 0)),                 # keep_first mask
            pl.BlockSpec((MB, 1), lambda g: (0, 0)),                 # keep_last mask
        ],
        out_specs=pl.BlockSpec((None, MB, WCout), lambda g: (g, 0, 0)),
    )

    out2d = pl.pallas_call(
        preact_block_kernel,
        out_shape=jax.ShapeDtypeStruct((G, MB, WCout), jnp.float32),
        grid_spec=grid_spec,
        compiler_params=pltpu.CompilerParams(
            dimension_semantics=("parallel",),
            # Explicit budget (scoped default); demo footprint is < 1 MiB, and
            # staying at 32 MiB keeps headroom on v7x's 64 MiB physical VMEM.
            vmem_limit_bytes=32 * 1024 * 1024),
    )(x2d, s1, b1, w1b, b2, w2b, wscb, keep_first, keep_last)

    return out2d.reshape(N, H, W, Cout)


def preact_block_reference(x_nhwc, params):
    """Pure-JAX reference with the same bf16 quantization points as the kernel."""
    s2 = params["bn2_scale"]
    h1 = _quick_gelu(x_nhwc * params["bn1_scale"] + params["bn1_bias"])
    h1b = h1.astype(jnp.bfloat16)
    w1b = (params["w1"] * s2[None, None, None, :]).astype(jnp.bfloat16)
    w2b = params["w2"].astype(jnp.bfloat16)
    wscb = params["w_sc"].astype(jnp.bfloat16)

    shortcut = jnp.einsum("nhwc,cd->nhwd", h1b, wscb,
                          preferred_element_type=jnp.float32)
    c1 = lax.conv_general_dilated(
        h1b, w1b, window_strides=(1, 1), padding="SAME",
        dimension_numbers=("NHWC", "HWIO", "NHWC"),
        preferred_element_type=jnp.float32)
    h2 = _quick_gelu(c1 + params["bn2_bias"])
    c2 = lax.conv_general_dilated(
        h2.astype(jnp.bfloat16), w2b, window_strides=(1, 1), padding="SAME",
        dimension_numbers=("NHWC", "HWIO", "NHWC"),
        preferred_element_type=jnp.float32)
    return c2 + shortcut


def make_params(key, in_planes, planes):
    """Deterministic synthetic parameters (module-shape-faithful)."""
    eps = 1e-5
    ks = jax.random.split(key, 12)

    def bn_params(k0, k1, k2, k3, c):
        gamma = 1.0 + 0.1 * jax.random.normal(k0, (c,), jnp.float32)
        beta = 0.1 * jax.random.normal(k1, (c,), jnp.float32)
        r_mean = 0.1 * jax.random.normal(k2, (c,), jnp.float32)
        r_var = 1.0 + 0.1 * jnp.abs(jax.random.normal(k3, (c,), jnp.float32))
        scale = gamma / jnp.sqrt(r_var + eps)
        bias = beta - r_mean * scale
        return scale, bias

    bn1_scale, bn1_bias = bn_params(ks[0], ks[1], ks[2], ks[3], in_planes)
    bn2_scale, bn2_bias = bn_params(ks[4], ks[5], ks[6], ks[7], planes)

    # Conv weights stored in HWIO (== PyTorch OIHW transposed to (2,3,1,0)).
    w1 = jax.random.normal(ks[8], (3, 3, in_planes, planes), jnp.float32) \
        * np.sqrt(2.0 / (9 * in_planes))
    w2 = jax.random.normal(ks[9], (3, 3, planes, planes), jnp.float32) \
        * np.sqrt(2.0 / (9 * planes))
    w_sc = jax.random.normal(ks[10], (in_planes, planes), jnp.float32) \
        * np.sqrt(2.0 / in_planes)

    return dict(bn1_scale=bn1_scale, bn1_bias=bn1_bias,
                bn2_scale=bn2_scale, bn2_bias=bn2_bias,
                w1=w1, w2=w2, w_sc=w_sc)


if __name__ == "__main__":
    key = jax.random.PRNGKey(0)
    k_x, k_p = jax.random.split(key)

    # PyTorch NCHW input shape.  Batch is 16 so NB=8 images are packed into the
    # matmul M dimension (M = 8*16 = 128 per grid step) while the grid stays at
    # length 2 (both v7x TensorCores get work).
    N, C_IN, H, W = 16, 4, 16, 16
    PLANES = 8                            # in_planes != planes -> shortcut conv
    STRIDE = 1                            # TODO(synk): stride > 1 unsupported

    x_nchw = jax.random.normal(k_x, (N, C_IN, H, W), jnp.float32)
    x_nhwc = jnp.transpose(x_nchw, (0, 2, 3, 1))   # NCHW -> NHWC for the kernel

    params = make_params(k_p, C_IN, PLANES)

    out = preact_block_pallas(x_nhwc, params)
    out = jax.block_until_ready(out)

    ref = jax.block_until_ready(preact_block_reference(x_nhwc, params))
    np.testing.assert_allclose(np.asarray(out), np.asarray(ref),
                               rtol=2e-3, atol=2e-3)

    # out can be converted back to PyTorch layout with transpose(0, 3, 1, 2).
    print("KERNEL_OK")
</pallas_src>

<mosaic_0001>
module attributes {stable_mosaic.version = 11 : i64} {
  func.func @preact_block_kernel(%arg0: i32, %arg1: memref<1x128x64xf32, #tpu.memory_space<vmem>>, %arg2: memref<1x64xf32, #tpu.memory_space<vmem>>, %arg3: memref<1x64xf32, #tpu.memory_space<vmem>>, %arg4: memref<3x64x128xbf16, #tpu.memory_space<vmem>>, %arg5: memref<1x128xf32, #tpu.memory_space<vmem>>, %arg6: memref<3x128x128xbf16, #tpu.memory_space<vmem>>, %arg7: memref<64x128xbf16, #tpu.memory_space<vmem>>, %arg8: memref<128x1xf32, #tpu.memory_space<vmem>>, %arg9: memref<128x1xf32, #tpu.memory_space<vmem>>, %arg10: memref<1x128x128xf32, #tpu.memory_space<vmem>>) attributes {dimension_semantics = [#tpu.dimension_semantics<parallel>], iteration_bounds = array<i64: 2>, scalar_prefetch = 0 : i64, scratch_operands = 0 : i64, tpu.core_type = #tpu.core_type<tc>, window_params = [{transform_indices = @transform_0, window_bounds = array<i64: 1, 128, 64>}, {pipeline_mode = #tpu.pipeline_mode<synchronous>, transform_indices = @transform_1, window_bounds = array<i64: 1, 64>}, {pipeline_mode = #tpu.pipeline_mode<synchronous>, transform_indices = @transform_2, window_bounds = array<i64: 1, 64>}, {pipeline_mode = #tpu.pipeline_mode<synchronous>, transform_indices = @transform_3, window_bounds = array<i64: 3, 64, 128>}, {pipeline_mode = #tpu.pipeline_mode<synchronous>, transform_indices = @transform_4, window_bounds = array<i64: 1, 128>}, {pipeline_mode = #tpu.pipeline_mode<synchronous>, transform_indices = @transform_5, window_bounds = array<i64: 3, 128, 128>}, {pipeline_mode = #tpu.pipeline_mode<synchronous>, transform_indices = @transform_6, window_bounds = array<i64: 64, 128>}, {pipeline_mode = #tpu.pipeline_mode<synchronous>, transform_indices = @transform_7, window_bounds = array<i64: 128, 1>}, {pipeline_mode = #tpu.pipeline_mode<synchronous>, transform_indices = @transform_8, window_bounds = array<i64: 128, 1>}, {transform_indices = @transform_9, window_bounds = array<i64: 1, 128, 128>}]} {
    %c0 = arith.constant 0 : index
    %c0_0 = arith.constant 0 : index
    %c0_1 = arith.constant 0 : index
    %0 = vector.load %arg1[%c0, %c0_0, %c0_1] : memref<1x128x64xf32, #tpu.memory_space<vmem>>, vector<1x128x64xf32>
    %1 = vector.shape_cast %0 : vector<1x128x64xf32> to vector<128x64xf32>
    %c0_2 = arith.constant 0 : index
    %c0_3 = arith.constant 0 : index
    %2 = vector.load %arg2[%c0_2, %c0_3] : memref<1x64xf32, #tpu.memory_space<vmem>>, vector<1x64xf32>
    %3 = vector.broadcast %2 : vector<1x64xf32> to vector<128x64xf32>
    %4 = arith.mulf %1, %3 : vector<128x64xf32>
    %c0_4 = arith.constant 0 : index
    %c0_5 = arith.constant 0 : index
    %5 = vector.load %arg3[%c0_4, %c0_5] : memref<1x64xf32, #tpu.memory_space<vmem>>, vector<1x64xf32>
    %6 = vector.broadcast %5 : vector<1x64xf32> to vector<128x64xf32>
    %7 = arith.addf %4, %6 : vector<128x64xf32>
    %cst = arith.constant 1.702000e+00 : f32
    %8 = vector.broadcast %cst : f32 to vector<128x64xf32>
    %9 = arith.mulf %8, %7 : vector<128x64xf32>
    %10 = arith.negf %9 : vector<128x64xf32>
    %11 = math.exp %10 : vector<128x64xf32>
    %cst_6 = arith.constant 1.000000e+00 : f32
    %12 = vector.broadcast %cst_6 : f32 to vector<128x64xf32>
    %13 = arith.addf %12, %11 : vector<128x64xf32>
    %14 = arith.divf %12, %13 : vector<128x64xf32>
    %15 = arith.mulf %7, %14 : vector<128x64xf32>
    %16 = arith.truncf %15 : vector<128x64xf32> to vector<128x64xbf16>
    %c0_7 = arith.constant 0 : index
    %c0_8 = arith.constant 0 : index
    %17 = vector.load %arg8[%c0_7, %c0_8] : memref<128x1xf32, #tpu.memory_space<vmem>>, vector<128x1xf32>
    %c0_9 = arith.constant 0 : index
    %c0_10 = arith.constant 0 : index
    %18 = vector.load %arg9[%c0_9, %c0_10] : memref<128x1xf32, #tpu.memory_space<vmem>>, vector<128x1xf32>
    %c0_11 = arith.constant 0 : index
    %c0_12 = arith.constant 0 : index
    %19 = vector.load %arg7[%c0_11, %c0_12] : memref<64x128xbf16, #tpu.memory_space<vmem>>, vector<64x128xbf16>
    %cst_13 = arith.constant dense<0.000000e+00> : vector<128x128xf32>
    %20 = tpu.matmul %16, %19, %cst_13 {dimension_numbers = #tpu.dot_dimension_numbers<[1], [0], [0], [1], [0, 0, 1, 1], [], []>} : vector<128x64xbf16>, vector<64x128xbf16>, vector<128x128xf32> -> vector<128x128xf32>
    %c0_14 = arith.constant 0 : index
    %c0_15 = arith.constant 0 : index
    %c0_16 = arith.constant 0 : index
    %21 = vector.load %arg4[%c0_14, %c0_15, %c0_16] : memref<3x64x128xbf16, #tpu.memory_space<vmem>>, vector<1x64x128xbf16>
    %22 = vector.shape_cast %21 : vector<1x64x128xbf16> to vector<64x128xbf16>
    %cst_17 = arith.constant dense<0.000000e+00> : vector<128x128xf32>
    %23 = tpu.matmul %16, %22, %cst_17 {dimension_numbers = #tpu.dot_dimension_numbers<[1], [0], [0], [1], [0, 0, 1, 1], [], []>} : vector<128x64xbf16>, vector<64x128xbf16>, vector<128x128xf32> -> vector<128x128xf32>
    %c1 = arith.constant 1 : index
    %c0_18 = arith.constant 0 : index
    %c0_19 = arith.constant 0 : index
    %24 = vector.load %arg4[%c1, %c0_18, %c0_19] : memref<3x64x128xbf16, #tpu.memory_space<vmem>>, vector<1x64x128xbf16>
    %25 = vector.shape_cast %24 : vector<1x64x128xbf16> to vector<64x128xbf16>
    %cst_20 = arith.constant dense<0.000000e+00> : vector<128x128xf32>
    %26 = tpu.matmul %16, %25, %cst_20 {dimension_numbers = #tpu.dot_dimension_numbers<[1], [0], [0], [1], [0, 0, 1, 1], [], []>} : vector<128x64xbf16>, vector<64x128xbf16>, vector<128x128xf32> -> vector<128x128xf32>
    %c2 = arith.constant 2 : index
    %c0_21 = arith.constant 0 : index
    %c0_22 = arith.constant 0 : index
    %27 = vector.load %arg4[%c2, %c0_21, %c0_22] : memref<3x64x128xbf16, #tpu.memory_space<vmem>>, vector<1x64x128xbf16>
    %28 = vector.shape_cast %27 : vector<1x64x128xbf16> to vector<64x128xbf16>
    %cst_23 = arith.constant dense<0.000000e+00> : vector<128x128xf32>
    %29 = tpu.matmul %16, %28, %cst_23 {dimension_numbers = #tpu.dot_dimension_numbers<[1], [0], [0], [1], [0, 0, 1, 1], [], []>} : vector<128x64xbf16>, vector<64x128xbf16>, vector<128x128xf32> -> vector<128x128xf32>
    %c1_i32 = arith.constant 1 : i32
    %30 = tpu.dynamic_rotate %23 by %c1_i32 dim 0 : vector<128x128xf32>, i32 -> vector<128x128xf32>
    %31 = vector.broadcast %17 : vector<128x1xf32> to vector<128x128xf32>
    %32 = arith.mulf %30, %31 : vector<128x128xf32>
    %c127_i32 = arith.constant 127 : i32
    %33 = tpu.dynamic_rotate %29 by %c127_i32 dim 0 : vector<128x128xf32>, i32 -> vector<128x128xf32>
    %34 = vector.broadcast %18 : vector<128x1xf32> to vector<128x128xf32>
    %35 = arith.mulf %33, %34 : vector<128x128xf32>
    %36 = arith.addf %26, %32 : vector<128x128xf32>
    %37 = arith.addf %36, %35 : vector<128x128xf32>
    %c0_24 = arith.constant 0 : index
    %c0_25 = arith.constant 0 : index
    %38 = vector.load %arg5[%c0_24, %c0_25] : memref<1x128xf32, #tpu.memory_space<vmem>>, vector<1x128xf32>
    %39 = vector.broadcast %38 : vector<1x128xf32> to vector<128x128xf32>
    %40 = arith.addf %37, %39 : vector<128x128xf32>
    %cst_26 = arith.constant 1.702000e+00 : f32
    %41 = vector.broadcast %cst_26 : f32 to vector<128x128xf32>
    %42 = arith.mulf %41, %40 : vector<128x128xf32>
    %43 = arith.negf %42 : vector<128x128xf32>
    %44 = math.exp %43 : vector<128x128xf32>
    %cst_27 = arith.constant 1.000000e+00 : f32
    %45 = vector.broadcast %cst_27 : f32 to vector<128x128xf32>
    %46 = arith.addf %45, %44 : vector<128x128xf32>
    %47 = arith.divf %45, %46 : vector<128x128xf32>
    %48 = arith.mulf %40, %47 : vector<128x128xf32>
    %49 = arith.truncf %48 : vector<128x128xf32> to vector<128x128xbf16>
    %c0_28 = arith.constant 0 : index
    %c0_29 = arith.constant 0 : index
    %c0_30 = arith.constant 0 : index
    %50 = vector.load %arg6[%c0_28, %c0_29, %c0_30] : memref<3x128x128xbf16, #tpu.memory_space<vmem>>, vector<1x128x128xbf16>
    %51 = vector.shape_cast %50 : vector<1x128x128xbf16> to vector<128x128xbf16>
    %cst_31 = arith.constant dense<0.000000e+00> : vector<128x128xf32>
    %52 = tpu.matmul %49, %51, %cst_31 {dimension_numbers = #tpu.dot_dimension_numbers<[1], [0], [0], [1], [0, 0, 1, 1], [], []>} : vector<128x128xbf16>, vector<128x128xbf16>, vector<128x128xf32> -> vector<128x128xf32>
    %c1_32 = arith.constant 1 : index
    %c0_33 = arith.constant 0 : index
    %c0_34 = arith.constant 0 : index
    %53 = vector.load %arg6[%c1_32, %c0_33, %c0_34] : memref<3x128x128xbf16, #tpu.memory_space<vmem>>, vector<1x128x128xbf16>
    %54 = vector.shape_cast %53 : vector<1x128x128xbf16> to vector<128x128xbf16>
    %cst_35 = arith.constant dense<0.000000e+00> : vector<128x128xf32>
    %55 = tpu.matmul %49, %54, %cst_35 {dimension_numbers = #tpu.dot_dimension_numbers<[1], [0], [0], [1], [0, 0, 1, 1], [], []>} : vector<128x128xbf16>, vector<128x128xbf16>, vector<128x128xf32> -> vector<128x128xf32>
    %c2_36 = arith.constant 2 : index
    %c0_37 = arith.constant 0 : index
    %c0_38 = arith.constant 0 : index
    %56 = vector.load %arg6[%c2_36, %c0_37, %c0_38] : memref<3x128x128xbf16, #tpu.memory_space<vmem>>, vector<1x128x128xbf16>
    %57 = vector.shape_cast %56 : vector<1x128x128xbf16> to vector<128x128xbf16>
    %cst_39 = arith.constant dense<0.000000e+00> : vector<128x128xf32>
    %58 = tpu.matmul %49, %57, %cst_39 {dimension_numbers = #tpu.dot_dimension_numbers<[1], [0], [0], [1], [0, 0, 1, 1], [], []>} : vector<128x128xbf16>, vector<128x128xbf16>, vector<128x128xf32> -> vector<128x128xf32>
    %c1_i32_40 = arith.constant 1 : i32
    %59 = tpu.dynamic_rotate %52 by %c1_i32_40 dim 0 : vector<128x128xf32>, i32 -> vector<128x128xf32>
    %60 = vector.broadcast %17 : vector<128x1xf32> to vector<128x128xf32>
    %61 = arith.mulf %59, %60 : vector<128x128xf32>
    %c127_i32_41 = arith.constant 127 : i32
    %62 = tpu.dynamic_rotate %58 by %c127_i32_41 dim 0 : vector<128x128xf32>, i32 -> vector<128x128xf32>
    %63 = vector.broadcast %18 : vector<128x1xf32> to vector<128x128xf32>
    %64 = arith.mulf %62, %63 : vector<128x128xf32>
    %65 = arith.addf %55, %61 : vector<128x128xf32>
    %66 = arith.addf %65, %64 : vector<128x128xf32>
    %67 = arith.addf %20, %66 : vector<128x128xf32>
    %c0_42 = arith.constant 0 : index
    %c0_43 = arith.constant 0 : index
    %c0_44 = arith.constant 0 : index
    %68 = vector.load %arg10[%c0_42, %c0_43, %c0_44] : memref<1x128x128xf32, #tpu.memory_space<vmem>>, vector<1x128x128xf32>
    %69 = vector.shape_cast %68 : vector<1x128x128xf32> to vector<128x128xf32>
    %70 = vector.shape_cast %67 : vector<128x128xf32> to vector<1x128x128xf32>
    tpu.vector_store %arg10[%c0_42, %c0_43, %c0_44], %70 {strides = array<i32>} : memref<1x128x128xf32, #tpu.memory_space<vmem>>, vector<1x128x128xf32>,
    return
  }
  func.func @transform_0(%arg0: i32) -> (i32, i32, i32) {
    %c0_i32 = arith.constant 0 : i32
    %c0_i32_0 = arith.constant 0 : i32
    %c0_i32_1 = arith.constant 0 : i32
    return %arg0, %c0_i32, %c0_i32_0 : i32, i32, i32
  }
  func.func @transform_1(%arg0: i32) -> (i32, i32) {
    %c0_i32 = arith.constant 0 : i32
    %c0_i32_0 = arith.constant 0 : i32
    %c0_i32_1 = arith.constant 0 : i32
    return %c0_i32, %c0_i32_0 : i32, i32
  }
  func.func @transform_2(%arg0: i32) -> (i32, i32) {
    %c0_i32 = arith.constant 0 : i32
    %c0_i32_0 = arith.constant 0 : i32
    %c0_i32_1 = arith.constant 0 : i32
    return %c0_i32, %c0_i32_0 : i32, i32
  }
  func.func @transform_3(%arg0: i32) -> (i32, i32, i32) {
    %c0_i32 = arith.constant 0 : i32
    %c0_i32_0 = arith.constant 0 : i32
    %c0_i32_1 = arith.constant 0 : i32
    %c0_i32_2 = arith.constant 0 : i32
    return %c0_i32, %c0_i32_0, %c0_i32_1 : i32, i32, i32
  }
  func.func @transform_4(%arg0: i32) -> (i32, i32) {
    %c0_i32 = arith.constant 0 : i32
    %c0_i32_0 = arith.constant 0 : i32
    %c0_i32_1 = arith.constant 0 : i32
    return %c0_i32, %c0_i32_0 : i32, i32
  }
  func.func @transform_5(%arg0: i32) -> (i32, i32, i32) {
    %c0_i32 = arith.constant 0 : i32
    %c0_i32_0 = arith.constant 0 : i32
    %c0_i32_1 = arith.constant 0 : i32
    %c0_i32_2 = arith.constant 0 : i32
    return %c0_i32, %c0_i32_0, %c0_i32_1 : i32, i32, i32
  }
  func.func @transform_6(%arg0: i32) -> (i32, i32) {
    %c0_i32 = arith.constant 0 : i32
    %c0_i32_0 = arith.constant 0 : i32
    %c0_i32_1 = arith.constant 0 : i32
    return %c0_i32, %c0_i32_0 : i32, i32
  }
  func.func @transform_7(%arg0: i32) -> (i32, i32) {
    %c0_i32 = arith.constant 0 : i32
    %c0_i32_0 = arith.constant 0 : i32
    %c0_i32_1 = arith.constant 0 : i32
    return %c0_i32, %c0_i32_0 : i32, i32
  }
  func.func @transform_8(%arg0: i32) -> (i32, i32) {
    %c0_i32 = arith.constant 0 : i32
    %c0_i32_0 = arith.constant 0 : i32
    %c0_i32_1 = arith.constant 0 : i32
    return %c0_i32, %c0_i32_0 : i32, i32
  }
  func.func @transform_9(%arg0: i32) -> (i32, i32, i32) {
    %c0_i32 = arith.constant 0 : i32
    %c0_i32_0 = arith.constant 0 : i32
    %c0_i32_1 = arith.constant 0 : i32
    return %arg0, %c0_i32, %c0_i32_0 : i32, i32, i32
  }
}

</mosaic_0001>

<bundles_post_ra>
// kernel: tpu_custom_call.1
= control target key start
LH: loop header
LB: loop body
LE: loop exit
PB: predicated region body
PF: predicated region fallthrough
CT: control target
= control target key end

     0   :  { %14 = vsyncpa [#allocation3], 0  ;;  %s4627_s0 = inlined_call_operand.vmem [shape: f32[2,128,64], index: 0, kind: input, shape index: {}]   ;;  %s4628_s1 = inlined_call_operand.vmem [shape: f32[1,64], index: 1, kind: input, shape index: {}]   ;;  %s4629_s2 = inlined_call_operand.vmem [shape: f32[1,64], index: 2, kind: input, shape index: {}]   ;;  %s4630_s3 = inlined_call_operand.vmem [shape: bf16[3,64,128], index: 3, kind: input, shape index: {}]   ;;  %s4631_s4 = inlined_call_operand.vmem [shape: f32[1,128], index: 4, kind: input, shape index: {}]   ;;  %s4632_s5 = inlined_call_operand.vmem [shape: bf16[3,128,128], index: 5, kind: input, shape index: {}]   ;;  %s4633_s6 = inlined_call_operand.vmem [shape: bf16[64,128], index: 6, kind: input, shape index: {}]   ;;  %s4634_s7 = inlined_call_operand.vmem [shape: f32[128,1], index: 7, kind: input, shape index: {}]   ;;  %s4635_s8 = inlined_call_operand.vmem [shape: f32[128,1], index: 8, kind: input, shape index: {}]   ;;  %s4636_s9 = inlined_call_operand.hbm [shape: f32[2,128,128], index: 9, kind: output, shape index: {}]  }
   0x1   :  { %16 = vsyncpa [#allocation3 + $0x1], 0  ;;  %s2933_s30 = smov 0   ;;  %s2935_s10 = smov 0  }
   0x2   :  { %s2937_s11 = smov 0   ;;  %s2939_s12 = smov 0  }
   0x3 LB: > { %s2954_s13 = sadd.s32 4294967295, %s2878_s12   ;;  %s2302_s14 = sadd.s32 4294967294, %s2878_s12   ;;  %s2878_s12 = sphi %s2939_s12, %s4836_s12   ;;  %s2874_s11 = sphi %s2937_s11, %s4835_s11   ;;  %s2870_s10 = sphi %s2935_s10, %s4834_s10   ;;  %s2866_s30 = sphi %s2933_s30, %s4833_s30  }
   0x4   : > { %s2958_s15 = sadd.s32 1, %s2878_s12   ;;  %s223_s16 = sadd.s32 1, %s2874_s11 }
   0x5   : > { %s220_s17 = ssub.s32 %s2878_s12, %s2958_s15  ;;  %p233_p0 = scmp.ne.s32.totalorder %s2874_s11, %s2870_s10 }
   0x6   : > { %p221_p1 = scmp.eq.s32.totalorder %s220_s17, 0  ;;  %p234_p2 = scmp.eq.s32.totalorder %s2954_s13, 1 }
   0x7   : > { %p239_p3 = scmp.ne.s32.totalorder %s2870_s10, %s2866_s30  ;;  %p240_p4 = scmp.eq.s32.totalorder %s2302_s14, 1 }
   0x8   : > { %s2969_s18 = scalar_select %p221_p1, %s2874_s11, %s223_s16  }
   0x9   : > { %p2971_p5 = por %p234_p2, %p233_p0  ;;  %p2975_p6 = por %p240_p4, %p239_p3 }
   0xa   : > { %p2305_p7 = scmp.ge.s32.totalorder %s2878_s12, 1  ;;  %p290_p8 = scmp.lt.s32.totalorder %s2878_s12, 3 }
   0xc   : > { %p291_p9 = pnand %p2305_p7, %p290_p8 }
   0xe   : > { %294 = sbr.rel (%p291_p9) target bundleno = 609 (0x261), region = 56 }
  0x13   : > { %v2594_v0 = vld [vmem:[%s4630_s3 + $0x18] sm:$0xff]  ;;  %p326_p10 = scmp.lt.s32.totalorder %s2954_s13, 1  ;;  %v2593_v3 = vld [vmem:[%s4630_s3 + $0x10] sm:$0xff]  ;;  %v2592_v6 = vld [vmem:[%s4630_s3 + $0x8] sm:$0xff]  ;;  %v2880_v56 = vmov 0   ;;  %s323_s23 = sand.u32 1, %s2870_s10  }
  0x14   : > { %v2987_v1 = vld [vmem:[%s4630_s3 + $0x58] sm:$0xff]  ;;  %833 = vmatpush.bf16.msra.mxu0 %v2594_v0  ;;  %2628 = vmatpush.bf16.msra.mxu3 %v2594_v0  ;;  %v3003_v4 = vld [vmem:[%s4630_s3 + $0x50] sm:$0xff]  ;;  %v3017_v7 = vld [vmem:[%s4628_s1] ss:$0 sm:$0xff]  ;;  %s2627_s25 = sshll.u32 %s2954_s13, 7  ;;  %s2225_s16 = scalar_lea.sflag [#allocation3], %s323_s23 }
  0x15   : > { %v2993_v2 = vld [vmem:[%s4630_s3 + $0x38] sm:$0xff]  ;;  %s327_s29 = scalar_select %p326_p10, %s2954_s13, 1  ;;  %2632 = vmatpush.bf16.msra.mxu1 %v2987_v1  ;;  %v3009_v5 = vld [vmem:[%s4630_s3 + $0x30] sm:$0xff]  ;;  %v3022_v8 = vld [vmem:[%s4630_s3 + $0x48] sm:$0xff]  ;;  %2682 = vset.pattern.permute.xlu0 %v2880_v56 }
  0x16   : > { %2636 = vmatpush.bf16.msra.mxu2 %v2993_v2  ;;  %v3027_v9 = vld [vmem:[%s4630_s3 + $0x28] sm:$0xff]  ;;  %v3037_v10 = vld [vmem:[%s4629_s2] ss:$0 sm:$0xff]  ;;  %2683 = vset.pattern.permute.xlu1 %v2880_v56  ;;  %s2236_s27 = scalar_lea.hbm %s4636_s9, %s2627_s25  ;;  %s2836_s25 = scalar_lea.hbm %s4636_s9, 256 }
  0x17   : > { %s2586_s24 = sshll.u32 %s327_s29, 7  ;;  %v2591_v29 = vld [vmem:[%s4630_s3] sm:$0xff]  ;;  %2684 = vset.pattern.permute.xlu2 %v2880_v56  ;;  %s2239_s14 = sshll.u32 %s2236_s27, 4  ;;  %s2240_s14 = int_to_ptr.hbm [resolvable:$true] %s2239_s14 }
  0x18   : > { %s3032_s22 = scalar_lea.vmem %s4627_s0, %s2586_s24  ;;  %834 = vmatpush.bf16.msra.mxu0 %v2593_v3  ;;  %2629 = vmatpush.bf16.msra.mxu3 %v2593_v3  ;;  %v3071_v30 = vld [vmem:[%s4630_s3 + $0x40] sm:$0xff]  ;;  %s2306_s24 = sshll.u32 %s323_s23, 7 }
  0x19   : > { %v332_v11 = vld [vmem:[%s3032_s22] sm:$0xff]  ;;  %v333_v12 = vld [vmem:[%s3032_s22 + $0x8] sm:$0xff]  ;;  %2633 = vmatpush.bf16.msra.mxu1 %v3003_v4  ;;  %v334_v18 = vld [vmem:[%s3032_s22 + $0x10] sm:$0xff]  ;;  %s2830_s17 = sshra.s32 %s2240_s14, 4  ;;  %s2831_s17 = int_to_ptr.hbm [resolvable:$true] %s2830_s17 }
  0x1a   : > { %v336_v13 = vld [vmem:[%s3032_s22 + $0x20] sm:$0xff]  ;;  %2637 = vmatpush.bf16.msra.mxu2 %v3009_v5  ;;  %v352_v14 = vmul.f32 %v3017_v7, %v332_v11  ;;  %v353_v15 = vmul.f32 %v3017_v7, %v333_v12  ;;  %v337_v16 = vld [vmem:[%s3032_s22 + $0x28] sm:$0xff]  ;;  %v335_v19 = vld [vmem:[%s3032_s22 + $0x18] sm:$0xff]  ;;  %v354_v21 = vmul.f32 %v3017_v7, %v334_v18  ;;  %s2832_s21 = scalar_lea.hbm %s2831_s17, 128  ;;  %p2837_p0 = scmp.lt.s32.totalorder %s2831_s17, %s4636_s9 }
  0x1b   : > { %v356_v17 = vmul.f32 %v3017_v7, %v336_v13  ;;  %v357_v20 = vmul.f32 %v3017_v7, %v337_v16  ;;  %v355_v22 = vmul.f32 %v3017_v7, %v335_v19  ;;  %v338_v23 = vld [vmem:[%s3032_s22 + $0x30] sm:$0xff]  ;;  %v339_v24 = vld [vmem:[%s3032_s22 + $0x38] sm:$0xff]  ;;  %v340_v48 = vld [vmem:[%s3032_s22 + $0x40] sm:$0xff]  ;;  %p2833_p11 = scmp.ne.s32.totalorder %s2831_s17, %s2832_s21  ;;  %p2838_p1 = scmp.lt.s32.totalorder %s2836_s25, %s2832_s21 }
  0x1c   : > { %v3056_v25 = vadd.f32 %v3037_v10, %v352_v14  ;;  %v3059_v26 = vadd.f32 %v3037_v10, %v353_v15  ;;  %v358_v28 = vmul.f32 %v3017_v7, %v338_v23  ;;  %835 = vmatpush.bf16.msra.mxu0 %v2592_v6  ;;  %2630 = vmatpush.bf16.msra.mxu3 %v2592_v6  ;;  %v341_v49 = vld [vmem:[%s3032_s22 + $0x48] sm:$0xff]  ;;  %v3106_v53 = vld [vmem:[%s4630_s3 + $0x20] sm:$0xff] }
  0x1d   : > { %v3062_v27 = vadd.f32 %v3037_v10, %v356_v17  ;;  %v3074_v31 = vadd.f32 %v3037_v10, %v357_v20  ;;  %v3077_v32 = vadd.f32 %v3037_v10, %v354_v21  ;;  %v3080_v33 = vadd.f32 %v3037_v10, %v355_v22  ;;  %2634 = vmatpush.bf16.msra.mxu1 %v3022_v8  ;;  %v732_v54 = vld [vmem:[%s4634_s7] sm:$0xff]  ;;  %v733_v15 = vld [vmem:[%s4634_s7 + $0x8] sm:$0xff]  ;;  %p2834_p12 = pnand %p2833_p11, %p2971_p5  ;;  %p2839_p2 = por %p2838_p1, %p2837_p0 }
  0x1e   : > { %2638 = vmatpush.bf16.msra.mxu2 %v3027_v9  ;;  %v2309_v34 = vmul.f32 -1.702, %v3056_v25  ;;  %v2310_v35 = vmul.f32 -1.702, %v3059_v26  ;;  %v359_v37 = vmul.f32 %v3017_v7, %v339_v24  ;;  %v3092_v45 = vadd.f32 %v3037_v10, %v358_v28  ;;  %v748_v57 = vld [vmem:[%s4635_s8] sm:$0xff]  ;;  %1006 = vperm.xlu0 %2682, %v732_v54  }
  0x1f   : > { %v2313_v36 = vmul.f32 -1.702, %v3062_v27  ;;  %v2314_v38 = vmul.f32 -1.702, %v3074_v31  ;;  %v2311_v39 = vmul.f32 -1.702, %v3077_v32  ;;  %v360_v51 = vmul.f32 %v3017_v7, %v340_v48  ;;  %1135 = vperm.xlu1 %2683, %v748_v57   ;;  %p2835_p13 = pneg %p2834_p12 }
  0x20   : > { %v420_v40 = vmul.f32 1.442695, %v2309_v34  ;;  %v422_v41 = vmul.f32 1.442695, %v2310_v35  ;;  %836 = vmatpush.bf16.msra.mxu0 %v2591_v29  ;;  %2631 = vmatpush.bf16.msra.mxu3 %v2591_v29  ;;  %v2312_v44 = vmul.f32 -1.702, %v3080_v33  ;;  %v3096_v47 = vadd.f32 %v3037_v10, %v359_v37 }
  0x21   : > { %v428_v42 = vmul.f32 1.442695, %v2313_v36  ;;  %v430_v43 = vmul.f32 1.442695, %v2314_v38  ;;  %2635 = vmatpush.bf16.msra.mxu1 %v3071_v30  ;;  %v424_v46 = vmul.f32 1.442695, %v2311_v39  ;;  %v361_v52 = vmul.f32 %v3017_v7, %v341_v49  ;;  %p2840_p3 = pnand %p2839_p2, %p2835_p13 }
  0x22   : > { %2688 = vpow2.f32 %v420_v40  ;;  %v426_v50 = vmul.f32 1.442695, %v2312_v44  ;;  %v2315_v55 = vmul.f32 -1.702, %v3092_v45  ;;  %v2316_v58 = vmul.f32 -1.702, %v3096_v47  ;;  %2639 = vmatpush.bf16.msra.mxu2 %v3106_v53 }
  0x23   : > { %2690 = vpow2.f32 %v422_v41  ;;  %v3117_v59 = vadd.f32 %v3037_v10, %v360_v51  ;;  %v3122_v61 = vadd.f32 %v3037_v10, %v361_v52 }
  0x24   : > { %924 = vmatpush.bf16.msrb.mxu0 %v2987_v1  ;;  %2692 = vpow2.f32 %v428_v42  ;;  %v432_v0 = vmul.f32 1.442695, %v2315_v55  ;;  %v434_v6 = vmul.f32 1.442695, %v2316_v58 }
  0x25   : > { %2694 = vpow2.f32 %v430_v43  ;;  %v2317_v11 = vmul.f32 -1.702, %v3117_v59  ;;  %v3138_v16 = vmul.f32 -1.702, %v3122_v61 }
  0x26   : > { %2696 = vpow2.f32 %v424_v46  ;;  %1011 = vperm.xlu0 %2682, %v733_v15   ;;  %v342_v15 = vld [vmem:[%s3032_s22 + $0x50] sm:$0xff] }
  0x27   : > { %2698 = vpow2.f32 %v426_v50  ;;  %v3148_v23 = vmul.f32 1.442695, %v2317_v11  ;;  %v438_v50 = vmul.f32 1.442695, %v3138_v16 }
  0x28   : > { %v2689_v60 = vpop.eup %2688  ;;  %925 = vmatpush.bf16.msrb.mxu0 %v3003_v4 }
  0x29   : > { %v2691_v62 = vpop.eup %2690  ;;  %v3124_v63 = vadd.f32 1.0, %v2689_v60 }
  0x2a   : > { %v2693_v1 = vpop.eup %2692  ;;  %v3126_v3 = vadd.f32 1.0, %v2691_v62 }
  0x2b   : > { %v2695_v12 = vpop.eup %2694  ;;  %2700 = vrcp.f32 %v3124_v63  ;;  %v477_v4 = vand.u32 2147483647, %v3124_v63  ;;  %v479_v14 = vand.u32 2147483648, %v3124_v63  ;;  %v3141_v19 = vadd.f32 1.0, %v2693_v1 }
  0x2c   : > { %v2697_v13 = vpop.eup %2696  ;;  %2702 = vrcp.f32 %v3126_v3  ;;  %926 = vmatpush.bf16.msrb.mxu0 %v3022_v8  ;;  %v492_v18 = vand.u32 2147483647, %v3126_v3  ;;  %v3143_v20 = vadd.f32 1.0, %v2695_v12  ;;  %v494_v21 = vand.u32 2147483648, %v3126_v3 }
  0x2d   : > { %v2699_v17 = vpop.eup %2698  ;;  %2704 = vpow2.f32 %v432_v0  ;;  %v3146_v22 = vadd.f32 1.0, %v2697_v13  ;;  %vm473_vm0 = vweird.f32 %v3124_v63  ;;  %vm488_vm1 = vweird.f32 %v3126_v3 }
  0x2e   : > { %2706 = vpow2.f32 %v434_v6  ;;  %v539_v8 = vand.u32 2147483648, %v3141_v19  ;;  %vm3154_vm2 = vcmp.eq.f32.partialorder %v477_v4, 8.507059e+37  ;;  %v3158_v28 = vor.u32 1.1754944e-38, %v479_v14  ;;  %v749_v4 = vld [vmem:[%s4635_s8 + $0x8] sm:$0xff] }
  0x2f   : > { %2708 = vrcp.f32 %v3141_v19  ;;  %v537_v29 = vand.u32 2147483647, %v3141_v19  ;;  %v3162_v34 = vadd.f32 1.0, %v2699_v17  ;;  %vm3165_vm3 = vcmp.eq.f32.partialorder %v492_v18, 8.507059e+37  ;;  %1140 = vperm.xlu1 %2683, %v749_v4  }
  0x30   : > { %2710 = vrcp.f32 %v3143_v20  ;;  %927 = vmatpush.bf16.msrb.mxu0 %v3071_v30  ;;  %v552_v37 = vand.u32 2147483647, %v3143_v20  ;;  %v554_v38 = vand.u32 2147483648, %v3143_v20  ;;  %v495_v41 = vor.u32 1.1754944e-38, %v494_v21 }
  0x31   : > { %v2701_v35 = vpop.eup %2700  ;;  %2712 = vrcp.f32 %v3146_v22  ;;  %vm533_vm4 = vweird.f32 %v3141_v19  ;;  %vm548_vm5 = vweird.f32 %v3143_v20  ;;  %v3176_v43 = vor.u32 1.1754944e-38, %v539_v8 }
  0x32   : > { %v2703_v39 = vpop.eup %2702  ;;  %v469_v40 = vmul.f32 %v2701_v35, %v3124_v63  ;;  %v507_v44 = vand.u32 2147483647, %v3146_v22  ;;  %v509_v46 = vand.u32 2147483648, %v3146_v22  ;;  %vm474_vm6 = vweird.f32 %v2701_v35  ;;  %v750_v63 = vld [vmem:[%s4635_s8 + $0x10] sm:$0xff] }
  0x33   : > { %v2705_v30 = vpop.eup %2704  ;;  %v484_v42 = vmul.f32 %v2703_v39, %v3126_v3  ;;  %vm3182_vm7 = vcmp.eq.f32.partialorder %v537_v29, 8.507059e+37  ;;  %vm503_vm8 = vweird.f32 %v3146_v22  ;;  %2714 = vrcp.f32 %v3162_v34  ;;  %vm3205_vm13 = vmor %vm473_vm0, %vm474_vm6  ;;  %1145 = vperm.xlu0 %2682, %v750_v63   ;;  %v734_v3 = vld [vmem:[%s4634_s7 + $0x10] sm:$0xff] }
  0x34   : > { %v3180_v48 = vpop.eup %2706  ;;  %v470_v49 = vsub.f32 1.0, %v469_v40  ;;  %vm489_vm9 = vweird.f32 %v2703_v39  ;;  %vm3190_vm10 = vcmp.eq.f32.partialorder %v552_v37, 8.507059e+37  ;;  %v555_v55 = vor.u32 1.1754944e-38, %v554_v38  ;;  %1016 = vperm.xlu2 %2684, %v734_v3  }
  0x35   : > { %v3188_v51 = vpop.eup %2708  ;;  %v485_v52 = vsub.f32 1.0, %v484_v42  ;;  %vm518_vm11 = vweird.f32 %v3162_v34  ;;  %v3197_v60 = vor.u32 1.1754944e-38, %v509_v46  ;;  %v522_v62 = vand.u32 2147483647, %v3162_v34  ;;  %vm3225_vm0 = vmor %vm488_vm1, %vm489_vm9 }
  0x36   : > { %v2711_v56 = vpop.eup %2710  ;;  %v471_v57 = vmul.f32 %v2701_v35, %v470_v49  ;;  %v529_v58 = vmul.f32 %v3188_v51, %v3141_v19  ;;  %vm534_vm14 = vweird.f32 %v3188_v51  ;;  %vm3211_vm15 = vcmp.eq.f32.partialorder %v507_v44, 8.507059e+37 }
  0x37   : > { %v3200_v0 = vpop.eup %2712  ;;  %v486_v6 = vmul.f32 %v2703_v39, %v485_v52  ;;  %v544_v11 = vmul.f32 %v2711_v56, %v3143_v20  ;;  %v524_v13 = vand.u32 2147483648, %v3162_v34  ;;  %vm549_vm6 = vweird.f32 %v2711_v56  ;;  %vm3252_vm1 = vmor %vm533_vm4, %vm534_vm14  ;;  %v751_v20 = vld [vmem:[%s4635_s8 + $0x18] sm:$0xff] }
  0x38   : > { %v472_v14 = vadd.f32 %v2701_v35, %v471_v57  ;;  %v530_v17 = vsub.f32 1.0, %v529_v58  ;;  %v499_v18 = vmul.f32 %v3200_v0, %v3146_v22  ;;  %vm504_vm12 = vweird.f32 %v3200_v0  ;;  %1150 = vperm.xlu1 %2683, %v751_v20  }
  0x39   : > { %v487_v21 = vadd.f32 %v2703_v39, %v486_v6  ;;  %v545_v8 = vsub.f32 1.0, %v544_v11  ;;  %v3232_v29 = vadd.f32 1.0, %v2705_v30  ;;  %v3237_v37 = vpop.eup %2714  ;;  %2716 = vpow2.f32 %v3148_v23 }
  0x3a   : > { %v476_v38 = vsel %vm3205_vm13, %v2701_v35, %v472_v14  ;;  %v531_v40 = vmul.f32 %v3188_v51, %v530_v17  ;;  %v500_v42 = vsub.f32 1.0, %v499_v18  ;;  %v514_v49 = vmul.f32 %v3237_v37, %v3162_v34  ;;  %v343_v34 = vld [vmem:[%s3032_s22 + $0x58] sm:$0xff]  ;;  %v345_v18 = vld [vmem:[%s3032_s22 + $0x68] sm:$0xff] }
  0x3b   : > { %v481_v30 = vsel %vm3154_vm2, %v3158_v28, %v476_v38  ;;  %v491_v44 = vsel %vm3225_vm0, %v2703_v39, %v487_v21  ;;  %v546_v35 = vmul.f32 %v2711_v56, %v545_v8  ;;  %vm3265_vm2 = vmor %vm548_vm5, %vm549_vm6  ;;  %vm519_vm4 = vweird.f32 %v3237_v37  ;;  %v738_v38 = vld [vmem:[%s4634_s7 + $0x30] sm:$0xff] }
  0x3c   : > { %v496_v23 = vsel %vm3165_vm3, %v495_v41, %v491_v44  ;;  %v708_v24 = vmul.f32 %v481_v30, %v3056_v25  ;;  %v532_v28 = vadd.f32 %v3188_v51, %v531_v40  ;;  %v501_v39 = vmul.f32 %v3200_v0, %v500_v42  ;;  %vm3275_vm3 = vmor %vm503_vm8, %vm504_vm12 }
  0x3d   : > { %v709_v52 = vmul.f32 %v496_v23, %v3059_v26  ;;  %v547_v57 = vadd.f32 %v2711_v56, %v546_v35  ;;  %v515_v36 = vsub.f32 1.0, %v514_v49  ;;  %v737_v26 = vld [vmem:[%s4634_s7 + $0x28] sm:$0xff]  ;;  %v3291_v58 = vadd.f32 1.0, %v3180_v48  ;;  %vm3312_vm5 = vmor %vm518_vm11, %vm519_vm4 }
  0x3e   : > { %v536_v41 = vsel %vm3252_vm1, %v3188_v51, %v532_v28  ;;  %v502_v22 = vadd.f32 %v3200_v0, %v501_v39  ;;  %2718 = vrcp.f32 %v3232_v29  ;;  %1031 = vperm.xlu0 %2682, %v737_v26   ;;  %vm523_vm8 = vcmp.eq.f32.partialorder %v522_v62, 8.507059e+37  ;;  %v344_v62 = vld [vmem:[%s3032_s22 + $0x60] sm:$0xff] }
  0x3f   : > { %v3294_v1 = vpack.c.bf16 %v709_v52, %v708_v24  ;;  %v541_v6 = vsel %vm3182_vm7, %v3176_v43, %v536_v41  ;;  %v551_v11 = vsel %vm3265_vm2, %v2711_v56, %v547_v57  ;;  %v516_v4 = vmul.f32 %v3237_v37, %v515_v36  ;;  %v2717_v63 = vpop.eup %2716 }
  0x40   : > { %v556_v51 = vsel %vm3190_vm10, %v555_v55, %v551_v11  ;;  %v712_v48 = vmul.f32 %v541_v6, %v3062_v27  ;;  %v506_v14 = vsel %vm3275_vm3, %v3200_v0, %v502_v22  ;;  %vm4688_vm7 = vcmask 523264  }
  0x41   : > { %2341 = vmatmul.msk.bf16.vlgmr.msra.gmra.mxu0 %vm4688_vm7, %v3294_v1  ;;  %v713_v27 = vmul.f32 %v556_v51, %v3074_v31  ;;  %v517_v54 = vadd.f32 %v3237_v37, %v516_v4  ;;  %v511_v55 = vsel %vm3211_vm15, %v3197_v60, %v506_v14  ;;  %v525_v56 = vor.u32 1.1754944e-38, %v524_v13  ;;  %vm4689_vm9 = vmmov %vm4688_vm7  ;;  %v755_v51 = vld [vmem:[%s4635_s8 + $0x38] sm:$0xff] }
  0x42   : > { %v567_v0 = vand.u32 2147483647, %v3232_v29  ;;  %2720 = vrcp.f32 %v3291_v58  ;;  %1257 = vmatpush.bf16.msra.mxu0 %v2993_v2  ;;  %v569_v60 = vand.u32 2147483648, %v3232_v29  ;;  %v3335_v13 = vadd.f32 1.0, %v2717_v63  ;;  %vm4690_vm10 = vmmov %vm4688_vm7  ;;  %v739_v63 = vld [vmem:[%s4634_s7 + $0x38] sm:$0xff] }
  0x43   : > { %v3327_v16 = vpack.c.bf16 %v713_v27, %v712_v48  ;;  %v521_v31 = vsel %vm3312_vm5, %v3237_v37, %v517_v54  ;;  %2722 = vpow2.f32 %v438_v50  ;;  %v710_v2 = vmul.f32 %v511_v55, %v3077_v32  ;;  %vm4691_vm12 = vmmov %vm4688_vm7  ;;  %v752_v37 = vld [vmem:[%s4635_s8 + $0x20] sm:$0xff] }
  0x44   : > { %v2719_v12 = vpop.eup %2718  ;;  %vm563_vm11 = vweird.f32 %v3232_v29  ;;  %v526_v21 = vsel %vm523_vm8, %v525_v56, %v521_v31  ;;  %vm3350_vm13 = vcmp.eq.f32.partialorder %v567_v0, 8.507059e+37  ;;  %vm578_vm14 = vweird.f32 %v3291_v58  ;;  %1155 = vperm.xlu1 %2683, %v752_v37   ;;  %v736_v50 = vld [vmem:[%s4634_s7 + $0x20] sm:$0xff]  ;;  %vm4700_vm5 = vmmov %vm4688_vm7 }
  0x45   : > { %2343 = vmatmul.msk.bf16.vlgmr.msra.gmra.mxu3 %vm4689_vm9, %v3327_v16  ;;  %2383 = vmatmul.msk.bf16.vlgmr.msra.gmra.mxu1 %vm4690_vm10, %v3327_v16  ;;  %v559_v17 = vmul.f32 %v2719_v12, %v3232_v29  ;;  %2724 = vrcp.f32 %v3335_v13  ;;  %vm564_vm15 = vweird.f32 %v2719_v12  ;;  %v570_v3 = vor.u32 1.1754944e-38, %v569_v60  ;;  %vm4703_vm8 = vmmov %vm4700_vm5 }
  0x46   : > { %2407 = vmatmul.msk.bf16.vlgmr.msra.gmra.mxu2 %vm4691_vm12, %v3327_v16  ;;  %1258 = vmatpush.bf16.msra.mxu0 %v3009_v5  ;;  %v362_v40 = vmul.f32 %v3017_v7, %v342_v15  ;;  %v582_v30 = vand.u32 2147483647, %v3291_v58  ;;  %v735_v5 = vld [vmem:[%s4634_s7 + $0x18] sm:$0xff]  ;;  %v363_v44 = vmul.f32 %v3017_v7, %v343_v34  ;;  %v364_v46 = vmul.f32 %v3017_v7, %v344_v62  ;;  %vm3377_vm0 = vmor %vm563_vm11, %vm564_vm15 }
  0x47   : > { %v560_v32 = vsub.f32 1.0, %v559_v17  ;;  %1036 = vperm.xlu0 %2682, %v738_v38   ;;  %v365_v35 = vmul.f32 %v3017_v7, %v345_v18  ;;  %v711_v49 = vmul.f32 %v526_v21, %v3080_v33  ;;  %v584_v28 = vand.u32 2147483648, %v3291_v58  ;;  %1021 = vperm.xlu2 %2684, %v735_v5   ;;  %v347_v17 = vld [vmem:[%s3032_s22 + $0x78] sm:$0xff]  ;;  %vm4704_vm9 = vmmov %vm4700_vm5 }
  0x48   : > { %v2721_v42 = vpop.eup %2720  ;;  %v3382_v52 = vadd.f32 %v3037_v10, %v362_v40  ;;  %v3385_v57 = vadd.f32 %v3037_v10, %v363_v44  ;;  %v3389_v33 = vadd.f32 %v3037_v10, %v364_v46  ;;  %vm3426_vm2 = vcmp.eq.f32.partialorder %v582_v30, 8.507059e+37  ;;  %v740_v46 = vld [vmem:[%s4634_s7 + $0x40] sm:$0xff]  ;;  %vm4705_vm12 = vmmov %vm4700_vm5 }
  0x49   : > { %v561_v23 = vmul.f32 %v2719_v12, %v560_v32  ;;  %v574_v24 = vmul.f32 %v2721_v42, %v3291_v58  ;;  %v2723_v19 = vpop.eup %2722  ;;  %v3392_v25 = vadd.f32 %v3037_v10, %v365_v35  ;;  %vm579_vm6 = vweird.f32 %v2721_v42 }
  0x4a   : > { %1259 = vmatpush.bf16.msra.mxu0 %v3027_v9  ;;  %v3394_v20 = vadd.f32 1.0, %v2723_v19  ;;  %v2319_v41 = vmul.f32 -1.702, %v3382_v52  ;;  %v2320_v22 = vmul.f32 -1.702, %v3385_v57  ;;  %v3400_v6 = vpack.c.bf16 %v711_v49, %v710_v2  ;;  %vm3416_vm1 = vmor %vm578_vm14, %vm579_vm6  ;;  %v753_v49 = vld [vmem:[%s4635_s8 + $0x28] sm:$0xff] }
  0x4b   : > { %v562_v36 = vadd.f32 %v2719_v12, %v561_v23  ;;  %v575_v29 = vsub.f32 1.0, %v574_v24  ;;  %v3396_v26 = vpop.eup %2724  ;;  %v585_v43 = vor.u32 1.1754944e-38, %v584_v28  ;;  %v2321_v27 = vmul.f32 -1.702, %v3389_v33  ;;  %v756_v23 = vld [vmem:[%s4635_s8 + $0x40] sm:$0xff] }
  0x4c   : > { %v589_v4 = vmul.f32 %v3396_v26, %v3335_v13  ;;  %2726 = vrcp.f32 %v3394_v20  ;;  %vm593_vm3 = vweird.f32 %v3335_v13  ;;  %vm594_vm4 = vweird.f32 %v3396_v26  ;;  %1041 = vperm.xlu1 %2683, %v739_v63   ;;  %v757_v63 = vld [vmem:[%s4635_s8 + $0x48] sm:$0xff] }
  0x4d   : > { %v566_v9 = vsel %vm3377_vm0, %v2719_v12, %v562_v36  ;;  %v576_v11 = vmul.f32 %v2721_v42, %v575_v29  ;;  %v599_v56 = vand.u32 2147483648, %v3335_v13  ;;  %v440_v0 = vmul.f32 1.442695, %v2319_v41  ;;  %vm3458_vm7 = vmor %vm593_vm3, %vm594_vm4 }
  0x4e   : > { %v571_v48 = vsel %vm3350_vm13, %v570_v3, %v566_v9  ;;  %1260 = vmatpush.bf16.msra.mxu0 %v3106_v53  ;;  %v590_v58 = vsub.f32 1.0, %v589_v4  ;;  %v442_v31 = vmul.f32 1.442695, %v2320_v22  ;;  %v346_v53 = vld [vmem:[%s3032_s22 + $0x70] sm:$0xff]  ;;  %v2322_v2 = vmul.f32 -1.702, %v3392_v25  ;;  %vm4706_vm0 = vmmov %vm4700_vm5 }
  0x4f   : > { %v577_v54 = vadd.f32 %v2721_v42, %v576_v11  ;;  %1170 = vperm.xlu0 %2682, %v755_v51   ;;  %v714_v12 = vmul.f32 %v571_v48, %v3092_v45  ;;  %1026 = vperm.xlu2 %2684, %v736_v50   ;;  %2728 = vpow2.f32 %v440_v0  ;;  %v444_v62 = vmul.f32 1.442695, %v2321_v27  ;;  %s4482_s22 = scalar_lea.vmem [#allocation2], %s2306_s24 }
  0x50   : > { %v591_v15 = vmul.f32 %v3396_v26, %v590_v58  ;;  %v366_v18 = vmul.f32 %v3017_v7, %v346_v53  ;;  %v597_v8 = vand.u32 2147483647, %v3335_v13  ;;  %2730 = vpow2.f32 %v442_v31  ;;  %s2237_s28 = sshll.u32 %s4482_s22, 4  ;;  %s2238_s28 = int_to_ptr.vmem [resolvable:$true] %s2237_s28 }
  0x51   : > { %2342 = vmatmul.msk.bf16.gmra.mxu0 %vm4700_vm5, %v3400_v6  ;;  %v581_v60 = vsel %vm3416_vm1, %v2721_v42, %v577_v54  ;;  %v446_v32 = vmul.f32 1.442695, %v2322_v2  ;;  %2732 = vpow2.f32 %v444_v62  ;;  %v367_v37 = vmul.f32 %v3017_v7, %v347_v17 }
  0x52   : > { %v586_v34 = vsel %vm3426_vm2, %v585_v43, %v581_v60  ;;  %v2727_v45 = vpop.eup %2726  ;;  %v592_v3 = vadd.f32 %v3396_v26, %v591_v15  ;;  %v3450_v38 = vadd.f32 %v3037_v10, %v366_v18  ;;  %v600_v30 = vor.u32 1.1754944e-38, %v599_v56  ;;  %v754_v43 = vld [vmem:[%s4635_s8 + $0x30] sm:$0xff] }
  0x53   : > { %v715_v21 = vmul.f32 %v586_v34, %v3096_v47  ;;  %v604_v42 = vmul.f32 %v2727_v45, %v3394_v20  ;;  %v614_v5 = vand.u32 2147483648, %v3394_v20  ;;  %2734 = vpow2.f32 %v446_v32 }
  0x54   : > { %v3465_v7 = vadd.f32 %v3037_v10, %v367_v37  ;;  %vm608_vm10 = vweird.f32 %v3394_v20  ;;  %vm609_vm11 = vweird.f32 %v2727_v45  ;;  %v612_v44 = vand.u32 2147483647, %v3394_v20  ;;  %1046 = vperm.xlu1 %2683, %v740_v46  }
  0x55   : > { %v3452_v40 = vpack.c.bf16 %v715_v21, %v714_v12  ;;  %v605_v13 = vsub.f32 1.0, %v604_v42  ;;  %v2729_v35 = vpop.eup %2728  ;;  %v596_v10 = vsel %vm3458_vm7, %v3396_v26, %v592_v3  ;;  %vm598_vm13 = vcmp.eq.f32.partialorder %v597_v8, 8.507059e+37  ;;  %vm610_vm14 = vmor %vm608_vm10, %vm609_vm11 }
  0x56   : > { %v2731_v24 = vpop.eup %2730  ;;  %v462_v19 = vadd.f32 1.0, %v2729_v35  ;;  %v2323_v39 = vmul.f32 -1.702, %v3450_v38  ;;  %v615_v29 = vor.u32 1.1754944e-38, %v614_v5  ;;  %v601_v41 = vsel %vm598_vm13, %v600_v30, %v596_v10  ;;  %v758_v35 = vld [vmem:[%s4635_s8 + $0x50] sm:$0xff]  ;;  %v743_v10 = vld [vmem:[%s4634_s7 + $0x58] sm:$0xff] }
  0x57   : > { %2344 = vmatmul.msk.bf16.gmra.mxu3 %vm4703_vm8, %v3452_v40  ;;  %2384 = vmatmul.msk.bf16.gmra.mxu1 %vm4704_vm9, %v3452_v40  ;;  %v606_v28 = vmul.f32 %v2727_v45, %v605_v13  ;;  %v2733_v36 = vpop.eup %2732  ;;  %v463_v26 = vadd.f32 1.0, %v2731_v24  ;;  %vm613_vm15 = vcmp.eq.f32.partialorder %v612_v44, 8.507059e+37  ;;  %v2324_v11 = vmul.f32 -1.702, %v3465_v7  ;;  %vm4711_vm8 = vmmov %vm4706_vm0  ;;  %v742_v44 = vld [vmem:[%s4634_s7 + $0x50] sm:$0xff] }
  0x58   : > { %2408 = vmatmul.msk.bf16.gmra.mxu2 %vm4705_vm12, %v3452_v40  ;;  %1160 = vperm.xlu2 %2684, %v753_v49   ;;  %2736 = vrcp.f32 %v462_v19  ;;  %v3495_v51 = vadd.f32 1.0, %v2733_v36  ;;  %v448_v48 = vmul.f32 1.442695, %v2323_v39  ;;  %v716_v14 = vmul.f32 %v601_v41, %v3117_v59  ;;  %vm4712_vm9 = vmmov %vm4706_vm0 }
  0x59   : > { %1175 = vperm.xlu0 %2682, %v756_v23   ;;  %v607_v22 = vadd.f32 %v2727_v45, %v606_v28  ;;  %v2735_v9 = vpop.eup %2734  ;;  %2738 = vrcp.f32 %v463_v26  ;;  %v627_v54 = vand.u32 2147483647, %v462_v19  ;;  %v629_v55 = vand.u32 2147483648, %v462_v19  ;;  %vm4715_vm12 = vmmov %vm4706_vm0 }
  0x5a   : > { %v3501_v50 = vadd.f32 1.0, %v2735_v9  ;;  %2740 = vrcp.f32 %v3495_v51  ;;  %v642_v58 = vand.u32 2147483647, %v463_v26  ;;  %v450_v56 = vmul.f32 1.442695, %v2324_v11 }
  0x5b   : > { %v611_v4 = vsel %vm610_vm14, %v2727_v45, %v607_v22  ;;  %v644_v59 = vand.u32 2147483648, %v463_v26  ;;  %vm623_vm6 = vweird.f32 %v462_v19  ;;  %vm638_vm1 = vweird.f32 %v463_v26 }
  0x5c   : > { %v616_v20 = vsel %vm613_vm15, %v615_v29, %v611_v4  ;;  %1180 = vperm.xlu1 %2683, %v757_v63   ;;  %2742 = vrcp.f32 %v3501_v50  ;;  %vm3510_vm2 = vcmp.eq.f32.partialorder %v627_v54, 8.507059e+37  ;;  %v630_v12 = vor.u32 1.1754944e-38, %v629_v55 }
  0x5d   : > { %v717_v27 = vmul.f32 %v616_v20, %v3122_v61  ;;  %2744 = vpow2.f32 %v448_v48  ;;  %vm3514_vm4 = vcmp.eq.f32.partialorder %v642_v58, 8.507059e+37  ;;  %v645_v18 = vor.u32 1.1754944e-38, %v644_v59 }
  0x5e   : > { %v2737_v0 = vpop.eup %2736  ;;  %2746 = vpow2.f32 %v450_v56  ;;  %vm653_vm7 = vweird.f32 %v3495_v51  ;;  %v657_v45 = vand.u32 2147483647, %v3495_v51  ;;  %v659_v3 = vand.u32 2147483648, %v3495_v51 }
  0x5f   : > { %v2739_v31 = vpop.eup %2738  ;;  %v619_v53 = vmul.f32 %v2737_v0, %v462_v19  ;;  %v3508_v61 = vpack.c.bf16 %v717_v27, %v716_v14  ;;  %vm624_vm3 = vweird.f32 %v2737_v0  ;;  %vm668_vm11 = vweird.f32 %v3501_v50 }
  0x60   : > { %1165 = vperm.xlu2 %2684, %v754_v43   ;;  %v634_v15 = vmul.f32 %v2739_v31, %v463_v26  ;;  %v2741_v34 = vpop.eup %2740  ;;  %vm639_vm5 = vweird.f32 %v2739_v31  ;;  %vm3528_vm10 = vmor %vm623_vm6, %vm624_vm3  ;;  %v674_v5 = vand.u32 2147483648, %v3501_v50  ;;  %v672_v28 = vand.u32 2147483647, %v3501_v50 }
  0x61   : > { %2381 = vmatmul.msk.bf16.vlgmr.msrb.gmra.mxu0 %vm4706_vm0, %v3294_v1  ;;  %v620_v2 = vsub.f32 1.0, %v619_v53  ;;  %v649_v32 = vmul.f32 %v2741_v34, %v3495_v51  ;;  %vm3539_vm13 = vmor %vm638_vm1, %vm639_vm5  ;;  %vm654_vm14 = vweird.f32 %v2741_v34  ;;  %1061 = vperm.xlu0 %2682, %v743_v10   ;;  %vm3552_vm0 = vcmp.eq.f32.partialorder %v657_v45, 8.507059e+37  ;;  %v745_v45 = vld [vmem:[%s4634_s7 + $0x68] sm:$0xff]  ;;  %v746_v10 = vld [vmem:[%s4634_s7 + $0x70] sm:$0xff] }
  0x62   : > { %v635_v62 = vsub.f32 1.0, %v634_v15  ;;  %v2743_v21 = vpop.eup %2742  ;;  %vm3561_vm6 = vmor %vm653_vm7, %vm654_vm14  ;;  %v660_v22 = vor.u32 1.1754944e-38, %v659_v3  ;;  %v675_v20 = vor.u32 1.1754944e-38, %v674_v5  ;;  %vm673_vm3 = vcmp.eq.f32.partialorder %v672_v28, 8.507059e+37  ;;  %v747_v28 = vld [vmem:[%s4634_s7 + $0x78] sm:$0xff] }
  0x63   : > { %v621_v8 = vmul.f32 %v2737_v0, %v620_v2  ;;  %v2745_v37 = vpop.eup %2744  ;;  %v664_v30 = vmul.f32 %v2743_v21, %v3501_v50  ;;  %v650_v46 = vsub.f32 1.0, %v649_v32  ;;  %vm669_vm15 = vweird.f32 %v2743_v21 }
  0x64   : > { %v636_v42 = vmul.f32 %v2739_v31, %v635_v62  ;;  %v466_v49 = vadd.f32 1.0, %v2745_v37  ;;  %1185 = vperm.xlu1 %2683, %v758_v35   ;;  %v2747_v19 = vpop.eup %2746  ;;  %vm670_vm1 = vmor %vm668_vm11, %vm669_vm15  ;;  %v761_v35 = vld [vmem:[%s4635_s8 + $0x68] sm:$0xff] }
  0x65   : > { %v622_v13 = vadd.f32 %v2737_v0, %v621_v8  ;;  %v665_v24 = vsub.f32 1.0, %v664_v30  ;;  %v651_v36 = vmul.f32 %v2741_v34, %v650_v46  ;;  %v467_v11 = vadd.f32 1.0, %v2747_v19  ;;  %v744_v8 = vld [vmem:[%s4634_s7 + $0x60] sm:$0xff] }
  0x66   : > { %v637_v23 = vadd.f32 %v2739_v31, %v636_v42  ;;  %2748 = vrcp.f32 %v466_v49  ;;  %v689_v53 = vand.u32 2147483648, %v466_v49 }
  0x67   : > { %2345 = vmatmul.msk.bf16.gmra.mxu3 %vm4711_vm8, %v3508_v61  ;;  %2385 = vmatmul.msk.bf16.gmra.mxu1 %vm4712_vm9, %v3508_v61  ;;  %v626_v39 = vsel %vm3528_vm10, %v2737_v0, %v622_v13  ;;  %v666_v9 = vmul.f32 %v2743_v21, %v665_v24  ;;  %v652_v48 = vadd.f32 %v2741_v34, %v651_v36  ;;  %2750 = vrcp.f32 %v467_v11  ;;  %v760_v24 = vld [vmem:[%s4635_s8 + $0x60] sm:$0xff] }
  0x68   : > { %2409 = vmatmul.msk.bf16.gmra.mxu2 %vm4715_vm12, %v3508_v61  ;;  %v641_v26 = vsel %vm3539_vm13, %v2739_v31, %v637_v23  ;;  %v631_v4 = vsel %vm3510_vm2, %v630_v12, %v626_v39  ;;  %vm4722_vm2 = vmmov %vm4711_vm8  ;;  %v687_v31 = vand.u32 2147483647, %v466_v49  ;;  %vm698_vm7 = vweird.f32 %v467_v11  ;;  %v763_v23 = vld [vmem:[%s4635_s8 + $0x78] sm:$0xff] }
  0x69   : > { %v646_v63 = vsel %vm3514_vm4, %v645_v18, %v641_v26  ;;  %v667_v51 = vadd.f32 %v2743_v21, %v666_v9  ;;  %v656_v14 = vsel %vm3561_vm6, %v2741_v34, %v652_v48  ;;  %v718_v43 = vmul.f32 %v631_v4, %v3382_v52  ;;  %vm4727_vm10 = vmmov %vm4722_vm2  ;;  %1066 = vperm.xlu0 %2682, %v744_v8  }
  0x6a   : > { %v719_v27 = vmul.f32 %v646_v63, %v3385_v57  ;;  %v661_v54 = vsel %vm3552_vm0, %v660_v22, %v656_v14  ;;  %vm683_vm4 = vweird.f32 %v466_v49  ;;  %v702_v62 = vand.u32 2147483647, %v467_v11  ;;  %vm4728_vm11 = vmmov %vm4722_vm2 }
  0x6b   : > { %v671_v55 = vsel %vm670_vm1, %v2743_v21, %v667_v51  ;;  %v720_v50 = vmul.f32 %v661_v54, %v3389_v33  ;;  %v704_v33 = vand.u32 2147483648, %v467_v11  ;;  %vm688_vm12 = vcmp.eq.f32.partialorder %v687_v31, 8.507059e+37  ;;  %v741_v21 = vld [vmem:[%s4634_s7 + $0x48] sm:$0xff]  ;;  %vm4729_vm13 = vmmov %vm4722_vm2 }
  0x6c   : > { %v2749_v58 = vpop.eup %2748  ;;  %v676_v56 = vsel %vm673_vm3, %v675_v20, %v671_v55  ;;  %v3582_v60 = vpack.c.bf16 %v719_v27, %v718_v43  ;;  %1051 = vperm.xlu2 %2684, %v741_v21   ;;  %1071 = vperm.xlu1 %2683, %v745_v45   ;;  %vm703_vm15 = vcmp.eq.f32.partialorder %v702_v62, 8.507059e+37  ;;  %vm4731_vm0 = vmmov %vm4722_vm2 }
  0x6d   : > { %v721_v0 = vmul.f32 %v676_v56, %v3392_v25  ;;  %v679_v59 = vmul.f32 %v2749_v58, %v466_v49  ;;  %v2751_v52 = vpop.eup %2750  ;;  %vm684_vm5 = vweird.f32 %v2749_v58  ;;  %v690_v25 = vor.u32 1.1754944e-38, %v689_v53  ;;  %vm4732_vm6 = vmmov %vm4731_vm0 }
  0x6e   : > { %4723 = vst [vmem:[#allocation5_spill] sm:$0xff] %v3582_v60  ;;  %v694_v15 = vmul.f32 %v2751_v52, %v467_v11  ;;  %vm3586_vm8 = vmor %vm683_vm4, %vm684_vm5  ;;  %vm699_vm9 = vweird.f32 %v2751_v52  ;;  %v705_v37 = vor.u32 1.1754944e-38, %v704_v33 }
  0x6f   : > { %v3584_v57 = vpack.c.bf16 %v721_v0, %v720_v50  ;;  %v680_v12 = vsub.f32 1.0, %v679_v59  ;;  %vm700_vm14 = vmor %vm698_vm7, %vm699_vm9 }
  0x70   : > { %v695_v34 = vsub.f32 1.0, %v694_v15  ;;  %vm4733_vm1 = vmmov %vm4731_vm0 }
  0x71   : > { %2382 = vmatmul.msk.bf16.gmra.mxu0 %vm4722_vm2, %v3400_v6  ;;  %4724 = vst [vmem:[#allocation6_spill] sm:$0xff] %v3584_v57  ;;  %v681_v2 = vmul.f32 %v2749_v58, %v680_v12  ;;  %1200 = vperm.xlu0 %2682, %v761_v35   ;;  %vm4734_vm3 = vmmov %vm4731_vm0 }
  0x72   : > { %v696_v32 = vmul.f32 %v2751_v52, %v695_v34  ;;  %vm4735_vm2 = vmmov %vm4731_vm0  ;;  %v985_v34 = vlaneseq }
  0x73   : > { %v682_v18 = vadd.f32 %v2749_v58, %v681_v2  ;;  %vm4736_vm4 = vmmov %vm4731_vm0 }
  0x74   : > { %v697_v42 = vadd.f32 %v2751_v52, %v696_v32  ;;  %1056 = vperm.xlu2 %2684, %v742_v44   ;;  %1076 = vperm.xlu1 %2683, %v746_v10   ;;  %vm4737_vm5 = vmmov %vm4731_vm0  ;;  %v3723_v21 = vshrl.u32 %v985_v34, 7 }
  0x75   : > { %v686_v3 = vsel %vm3586_vm8, %v2749_v58, %v682_v18  ;;  %vm4738_vm7 = vmmov %vm4731_vm0 }
  0x76   : > { %v691_v47 = vsel %vm688_vm12, %v690_v25, %v686_v3  ;;  %v701_v30 = vsel %vm700_vm14, %v2751_v52, %v697_v42  ;;  %v2610_v25 = vld [vmem:[%s4632_s5 + $0x38] sm:$0xff]  ;;  %vm987_vm8 = vcmp.lt.s32.totalorder %v3723_v21, 1  ;;  %vm1116_vm9 = vcmp.lt.s32.totalorder %v3723_v21, 7 }
  0x77   : > { %2346 = vmatmul.msk.bf16.gmra.mxu3 %vm4727_vm10, %v3582_v60  ;;  %2386 = vmatmul.msk.bf16.gmra.mxu1 %vm4728_vm11, %v3582_v60  ;;  %v722_v5 = vmul.f32 %v691_v47, %v3450_v38  ;;  %v706_v13 = vsel %vm703_vm15, %v705_v37, %v701_v30  ;;  %v759_v38 = vld [vmem:[%s4635_s8 + $0x58] sm:$0xff] }
  0x78   : > { %2410 = vmatmul.msk.bf16.gmra.mxu2 %vm4729_vm13, %v3582_v60  ;;  %v723_v46 = vmul.f32 %v706_v13, %v3465_v7  ;;  %v762_v7 = vld [vmem:[%s4635_s8 + $0x70] sm:$0xff]  ;;  %1746 = vmatpush.bf16.msrb.mxu3 %v2610_v25  ;;  %v2590_v42 = vld [vmem:[%s4633_s6 + $0x18] sm:$0xff] }
  0x79   : > { %1205 = vperm.xlu0 %2682, %v762_v7   ;;  %v2618_v30 = vld [vmem:[%s4632_s5 + $0x78] sm:$0xff]  ;;  %2163 = vmatpush.bf16.msrb.mxu2 %v2590_v42 }
  0x7a   : > { %v3619_v49 = vpack.c.bf16 %v723_v46, %v722_v5  ;;  %v2609_v5 = vld [vmem:[%s4632_s5 + $0x30] sm:$0xff]  ;;  %2070 = vmatpush.bf16.msrb.mxu1 %v2618_v30 }
  0x7c   : > { %4730 = vst [vmem:[#allocation7_spill] sm:$0xff] %v3619_v49  ;;  %1190 = vperm.xlu2 %2684, %v759_v38   ;;  %1210 = vperm.xlu1 %2683, %v763_v23  }
  0x7d   : > { %1747 = vmatpush.bf16.msrb.mxu3 %v2609_v5 }
  0x81   : > { %2405 = vmatmul.msk.bf16.vlgmr.msra.gmra.mxu0 %vm4731_vm0, %v3294_v1 }
  0x84   : > { %1195 = vperm.xlu2 %2684, %v760_v24  }
  0x87   : > { %2347 = vmatmul.msk.bf16.gmra.mxu3 %vm4732_vm6, %v3584_v57  ;;  %2387 = vmatmul.msk.bf16.gmra.mxu1 %vm4733_vm1, %v3584_v57 }
  0x88   : > { %2411 = vmatmul.msk.bf16.gmra.mxu2 %vm4734_vm3, %v3584_v57 }
  0x8c   : > { %1081 = vperm.xlu2 %2684, %v747_v28  }
  0x8e   : > { %v3660_v26 = vpop.permute.xlu2 %1016 }
  0x8f   : > { %4740 = vst [vmem:[#allocation9_spill] sm:$0xff] %v3660_v26 }
  0x90   : > { %v3652_v19 = vpop.permute.xlu0 %1006 }
  0x91   : > { %2406 = vmatmul.msk.bf16.gmra.mxu0 %vm4735_vm2, %v3400_v6  ;;  %v3654_v39 = vpop.permute.xlu1 %1135 }
  0x97   : > { %2348 = vmatmul.msk.bf16.gmra.mxu3 %vm4736_vm4, %v3619_v49  ;;  %2388 = vmatmul.msk.bf16.gmra.mxu1 %vm4737_vm5, %v3619_v49 }
  0x98   : > { %2412 = vmatmul.msk.bf16.gmra.mxu2 %vm4738_vm7, %v3619_v49  ;;  %v3656_v36 = vpop.permute.xlu0 %1011  ;;  %vm4793_vm7 = vmmov %vm4733_vm1 }
  0x99   : > { %4739 = vst [vmem:[#allocation8_spill] sm:$0xff] %v3656_v36 }
  0xa1   : > { %v3664_v22 = vpop.permute.xlu1 %1140  ;;  %v3676_v20 = vpop.permute.xlu2 %1021 }
  0xa5   : > { %v3668_v11 = vpop.permute.xlu0 %1145 }
  0xa9   : > { %v3690_v58 = vpop.permute.xlu2 %1026 }
  0xaa   : > { %v3678_v51 = vpop.permute.xlu1 %1150  ;;  %4742 = vst [vmem:[#allocation11_spill] sm:$0xff] %v3690_v58 }
  0xb0   : > { %v3684_v27 = vpop.permute.xlu0 %1031 }
  0xb1   : > { %4741 = vst [vmem:[#allocation10_spill] sm:$0xff] %v3684_v27 }
  0xb2   : > { %v3706_v12 = vpop.permute.xlu2 %1160 }
  0xb3   : > { %4745 = vst [vmem:[#allocation14_spill] sm:$0xff] %v3706_v12 }
  0xb6   : > { %v3694_v50 = vpop.permute.xlu1 %1155 }
  0xb7   : > { %4743 = vst [vmem:[#allocation12_spill] sm:$0xff] %v3694_v50 }
  0xb9   : > { %v3698_v59 = vpop.permute.xlu0 %1036 }
  0xba   : > { %4744 = vst [vmem:[#allocation13_spill] sm:$0xff] %v3698_v59  ;;  %v3725_v8 = vpop.permute.xlu2 %1165 }
  0xbe   : > { %v3658_v29 = vpop.f32.mrf.mxu0  ;;  %v3708_v15 = vpop.permute.xlu1 %1041 }
  0xc1   : > { %v3712_v33 = vpop.permute.xlu0 %1170 }
  0xc2   : > { %v3662_v41 = vpop.f32.mrf.mxu1 }
  0xc6   : > { %v3666_v9 = vpop.f32.mrf.mxu0  ;;  %v3728_v37 = vpop.permute.xlu1 %1046 }
  0xc7   : > { %4746 = vst [vmem:[#allocation15_spill] sm:$0xff] %v3728_v37 }
  0xc8   : > { %v3670_v4 = vpop.f32.mrf.mxu3 }
  0xc9   : > { %v3672_v63 = vpop.f32.mrf.mxu2  ;;  %v973_v28 = vrot.slane %v3670_v4, 7 }
  0xca   : > { %v3674_v48 = vpop.f32.mrf.mxu1 }
  0xcb   : > { %v3745_v10 = vpop.permute.xlu0 %1175  ;;  %v1105_v42 = vrot.slane %v3674_v48, 1 }
  0xcc   : > { %4747 = vst [vmem:[#allocation16_spill] sm:$0xff] %v3745_v10 }
  0xce   : > { %v3680_v14 = vpop.f32.mrf.mxu0 }
  0xd0   : > { %v3682_v43 = vpop.f32.mrf.mxu3 }
  0xd1   : > { %v3686_v54 = vpop.f32.mrf.mxu2  ;;  %v4639_v38 = vrot.slane %v3682_v43, 7 }
  0xd3   : > { %v998_v5 = vsel %vm987_vm8, %v973_v28, %v4639_v38 }
  0xd4   : > { %v3688_v55 = vpop.f32.mrf.mxu1 }
  0xd6   : > { %v3692_v56 = vpop.f32.mrf.mxu0 }
  0xd7   : > { %v4751_v30 = vrot.slane %v3692_v56, 7 }
  0xda   : > { %v3696_v0 = vpop.f32.mrf.mxu3 }
  0xdb   : > { %v3700_v31 = vpop.f32.mrf.mxu2 }
  0xdc   : > { %v3702_v53 = vpop.f32.mrf.mxu1 }
  0xde   : > { %v3704_v52 = vpop.f32.mrf.mxu0 }
  0xe2   : > { %v3710_v2 = vpop.f32.mrf.mxu3 }
  0xe3   : > { %v3714_v17 = vpop.f32.mrf.mxu2  ;;  %v4638_v45 = vrot.slane %v3710_v2, 7 }
  0xe4   : > { %v3719_v62 = vpop.f32.mrf.mxu1 }
  0xe5   : > { %v4637_v44 = vrot.slane %v3719_v62, 1 }
  0xe6   : > { %v3721_v18 = vpop.f32.mrf.mxu0 }
  0xea   : > { %v858_v32 = vpop.f32.mrf.mxu3 }
  0xeb   : > { %v977_v3 = vrot.slane %v858_v32, 7  ;;  %v1282_v47 = vpop.f32.mrf.mxu2  ;;  %v3758_v32 = vpop.permute.xlu2 %1051 }
  0xec   : > { %v951_v13 = vpop.f32.mrf.mxu1  ;;  %4748 = vst [vmem:[#allocation17_spill] sm:$0xff] %v3758_v32 }
  0xed   : > { %v1109_v46 = vrot.slane %v951_v13, 1  ;;  %v995_v35 = vsel %vm987_vm8, %v4638_v45, %v977_v3  ;;  %v3769_v13 = vld [vmem:[%s4631_s4] ss:$0 sm:$0xff] }
  0xee   : > { %v1092_v7 = vmul.f32 %v3728_v37, %v995_v35  ;;  %v3750_v23 = vpop.f32.mrf.mxu0 }
  0xef   : > { %v1123_v24 = vsel %vm1116_vm9, %v4637_v44, %v1109_v46  ;;  %v2617_v44 = vld [vmem:[%s4632_s5 + $0x70] sm:$0xff] }
  0xf0   : > { %v1221_v25 = vmul.f32 %v3745_v10, %v1123_v24  ;;  %v1283_v34 = vadd.f32 %v1282_v47, %v1092_v7  ;;  %v3772_v24 = vpop.permute.xlu1 %1180  ;;  %v1089_v10 = vmul.f32 %v3684_v27, %v998_v5  ;;  %2071 = vmatpush.bf16.msrb.mxu1 %v2617_v44 }
  0xf1   : > { %4749 = vst [vmem:[#allocation18_spill] sm:$0xff] %v3772_v24 }
  0xf2   : > { %v1310_v4 = vadd.f32 %v1283_v34, %v1221_v25  ;;  %v860_v35 = vpop.f32.mrf.mxu3  ;;  %v1275_v57 = vadd.f32 %v3686_v54, %v1089_v10  ;;  %v2608_v54 = vld [vmem:[%s4632_s5 + $0x28] sm:$0xff] }
  0xf3   : > { %v978_v7 = vrot.slane %v860_v35, 7  ;;  %v1284_v48 = vpop.f32.mrf.mxu2  ;;  %v4750_v35 = vrot.slane %v3688_v55, 1  ;;  %1748 = vmatpush.bf16.msrb.mxu3 %v2608_v54 }
  0xf4   : > { %v3778_v45 = vadd.f32 %v3769_v13, %v1310_v4  ;;  %v954_v38 = vpop.f32.mrf.mxu1 }
  0xf5   : > { %v1110_v25 = vrot.slane %v954_v38, 1  ;;  %v994_v34 = vsel %vm987_vm8, %v977_v3, %v978_v7  ;;  %v1126_v47 = vsel %vm1116_vm9, %v1105_v42, %v4750_v35  ;;  %v999_v38 = vsel %vm987_vm8, %v4751_v30, %v973_v28 }
  0xf6   : > { %v2421_v37 = vmul.f32 -1.702, %v3778_v45  ;;  %v1093_v4 = vmul.f32 %v3758_v32, %v994_v34  ;;  %v3790_v49 = vpop.f32.mrf.mxu0  ;;  %v1218_v35 = vmul.f32 %v3706_v12, %v1126_v47  ;;  %v4752_v34 = vrot.slane %v3662_v41, 1 }
  0xf7   : > { %v1122_v3 = vsel %vm1116_vm9, %v1109_v46, %v1110_v25  ;;  %v1088_v60 = vmul.f32 %v3690_v58, %v999_v38  ;;  %v4758_v12 = vrot.slane %v3696_v0, 7 }
  0xf8   : > { %v1386_v44 = vmul.f32 1.442695, %v2421_v37  ;;  %v1222_v5 = vmul.f32 %v3772_v24, %v1122_v3  ;;  %v1285_v27 = vadd.f32 %v1284_v48, %v1093_v4  ;;  %v1127_v32 = vsel %vm1116_vm9, %v4752_v34, %v1105_v42  ;;  %v3808_v48 = vpop.permute.xlu2 %1056 }
  0xf9   : > { %v970_v37 = vrot.slane %v3666_v9, 7  ;;  %4753 = vst [vmem:[#allocation19_spill] sm:$0xff] %v3808_v48  ;;  %v1217_v10 = vmul.f32 %v3694_v50, %v1127_v32  ;;  %v1307_v38 = vadd.f32 %v1275_v57, %v1218_v35 }
  0xfa   : > { %2752 = vpow2.f32 %v1386_v44  ;;  %v1311_v28 = vadd.f32 %v1285_v27, %v1222_v5  ;;  %v863_v30 = vpop.f32.mrf.mxu3  ;;  %v971_v27 = vrot.slane %v3680_v14, 7  ;;  %v3820_v5 = vpop.permute.xlu1 %1185 }
  0xfb   : > { %v979_v3 = vrot.slane %v863_v30, 7  ;;  %v1287_v47 = vpop.f32.mrf.mxu2  ;;  %4754 = vst [vmem:[#allocation20_spill] sm:$0xff] %v3820_v5  ;;  %v1273_v30 = vadd.f32 %v3672_v63, %v1088_v60 }
  0xfc   : > { %v3815_v42 = vadd.f32 %v3769_v13, %v1311_v28  ;;  %v956_v4 = vpop.f32.mrf.mxu1  ;;  %v1001_v24 = vsel %vm987_vm8, %v970_v37, %v971_v27 }
  0xfd   : > { %v1111_v44 = vrot.slane %v956_v4, 1  ;;  %v993_v9 = vsel %vm987_vm8, %v978_v7, %v979_v3  ;;  %v4755_v7 = vrot.slane %v3658_v29, 7  ;;  %v4650_v4 = vrot.slane %v3750_v23, 1 }
  0xfe   : > { %v2422_v32 = vmul.f32 -1.702, %v3815_v42  ;;  %v1094_v28 = vmul.f32 %v3808_v48, %v993_v9  ;;  %v3826_v46 = vpop.f32.mrf.mxu0  ;;  %v3838_v9 = vadd.f32 %v3769_v13, %v1307_v38 }
  0xff   : > { %v1121_v57 = vsel %vm1116_vm9, %v1110_v25, %v1111_v44  ;;  %v1002_v35 = vsel %vm987_vm8, %v4755_v7, %v970_v37  ;;  %v3843_v25 = vpop.permute.xlu0 %1061  ;;  %v1306_v7 = vadd.f32 %v1273_v30, %v1217_v10  ;;  %v4761_v37 = vrot.slane %v3721_v18, 1 }
 0x100   : > { %v2753_v54 = vpop.eup %2752  ;;  %v1388_v60 = vmul.f32 1.442695, %v2422_v32  ;;  %v1223_v63 = vmul.f32 %v3820_v5, %v1121_v57  ;;  %v1288_v34 = vadd.f32 %v1287_v47, %v1094_v28  ;;  %4756 = vst [vmem:[#allocation21_spill] sm:$0xff] %v3838_v9  ;;  %v4759_v32 = vrot.slane %v3682_v43, 7 }
 0x101   : > { %v3841_v48 = vadd.f32 1.0, %v2753_v54  ;;  %4757 = vst [vmem:[#allocation22_spill] sm:$0xff] %v3843_v25  ;;  %v3854_v54 = vpop.permute.xlu2 %1190  ;;  %v1130_v10 = vsel %vm1116_vm9, %v4761_v37, %v4650_v4  ;;  %v3869_v30 = vmul.f32 %v3660_v26, %v1001_v24  ;;  %v2607_v24 = vld [vmem:[%s4632_s5 + $0x20] sm:$0xff]  ;;  %v3886_v37 = vadd.f32 %v3769_v13, %v1306_v7 }
 0x102   : > { %v997_v47 = vsel %vm987_vm8, %v4759_v32, %v4758_v12  ;;  %2754 = vpow2.f32 %v1388_v60  ;;  %v1312_v38 = vadd.f32 %v1288_v34, %v1223_v63  ;;  %v865_v28 = vpop.f32.mrf.mxu3  ;;  %4760 = vst [vmem:[#allocation23_spill] sm:$0xff] %v3854_v54  ;;  %v1085_v34 = vmul.f32 %v3656_v36, %v1002_v35  ;;  %v2616_v35 = vld [vmem:[%s4632_s5 + $0x68] sm:$0xff]  ;;  %1749 = vmatpush.bf16.msrb.mxu3 %v2607_v24 }
 0x103   : > { %2756 = vrcp.f32 %v3841_v48  ;;  %v980_v57 = vrot.slane %v865_v28, 7  ;;  %v1289_v14 = vpop.f32.mrf.mxu2  ;;  %v2418_v60 = vmul.f32 -1.702, %v3838_v9  ;;  %v1090_v63 = vmul.f32 %v3698_v59, %v997_v47  ;;  %2072 = vmatpush.bf16.msrb.mxu1 %v2616_v35 }
 0x104   : > { %v3863_v43 = vadd.f32 %v3769_v13, %v1312_v38  ;;  %v3865_v12 = vpop.f32.mrf.mxu1  ;;  %v2589_v38 = vld [vmem:[%s4633_s6 + $0x10] sm:$0xff]  ;;  %v4762_v47 = vrot.slane %v3702_v53, 1  ;;  %v1214_v58 = vmul.f32 %v3664_v22, %v1130_v10  ;;  %vm1543_vm10 = vweird.f32 %v3841_v48 }
 0x105   : > { %v1112_v32 = vrot.slane %v3865_v12, 1  ;;  %v992_v28 = vsel %vm987_vm8, %v979_v3, %v980_v57  ;;  %v4763_v12 = vrot.slane %v3688_v55, 1  ;;  %2164 = vmatpush.bf16.msrb.mxu2 %v2589_v38 }
 0x106   : > { %v2423_v4 = vmul.f32 -1.702, %v3863_v43  ;;  %v1095_v5 = vmul.f32 %v3843_v25, %v992_v28  ;;  %v1264_v59 = vpop.f32.mrf.mxu0  ;;  %v1380_v25 = vmul.f32 1.442695, %v2418_v60 }
 0x107   : > { %v1125_v3 = vsel %vm1116_vm9, %v4763_v12, %v4762_v47  ;;  %v1120_v50 = vsel %vm1116_vm9, %v1111_v44, %v1112_v32  ;;  %v1265_v26 = vadd.f32 %v1264_v59, %v1085_v34  ;;  %v4764_v47 = vrot.slane %v3692_v56, 7 }
 0x108   : > { %v2755_v7 = vpop.eup %2754  ;;  %v1390_v36 = vmul.f32 1.442695, %v2423_v4  ;;  %v1224_v55 = vmul.f32 %v3854_v54, %v1120_v50  ;;  %v1290_v9 = vadd.f32 %v1289_v14, %v1095_v5  ;;  %v1219_v44 = vmul.f32 %v3725_v8, %v1125_v3 }
 0x109   : > { %v1000_v28 = vsel %vm987_vm8, %v971_v27, %v4764_v47  ;;  %v3904_v12 = vpop.eup %2756  ;;  %v3907_v10 = vadd.f32 1.0, %v2755_v7  ;;  %v1303_v59 = vadd.f32 %v1265_v26, %v1214_v58  ;;  %v1278_v34 = vadd.f32 %v3700_v31, %v1090_v63  ;;  %v3921_v26 = vpop.permute.xlu0 %1066  ;;  %v2615_v63 = vld [vmem:[%s4632_s5 + $0x60] sm:$0xff] }
 0x10a   : > { %v1103_v4 = vrot.slane %v3790_v49, 1  ;;  %v1313_v50 = vadd.f32 %v1290_v9, %v1224_v55  ;;  %v3911_v5 = vpop.f32.mrf.mxu3  ;;  %v1539_v56 = vmul.f32 %v3904_v12, %v3841_v48  ;;  %v2417_v27 = vmul.f32 -1.702, %v3886_v37  ;;  %4765 = vst [vmem:[#allocation24_spill] sm:$0xff] %v3921_v26  ;;  %v3939_v7 = vpop.permute.xlu2 %1195  ;;  %2073 = vmatpush.bf16.msrb.mxu1 %v2615_v63 }
 0x10b   : > { %2758 = vrcp.f32 %v3907_v10  ;;  %v981_v14 = vrot.slane %v3911_v5, 7  ;;  %v3919_v60 = vadd.f32 %v3769_v13, %v1303_v59  ;;  %v1292_v58 = vpop.f32.mrf.mxu2  ;;  %v3929_v9 = vmul.f32 %v3676_v20, %v1000_v28  ;;  %4766 = vst [vmem:[#allocation25_spill] sm:$0xff] %v3939_v7 }
 0x10c   : > { %2760 = vpow2.f32 %v1390_v36  ;;  %v3924_v49 = vadd.f32 %v3769_v13, %v1313_v50  ;;  %v3926_v31 = vpop.f32.mrf.mxu1  ;;  %v1540_v38 = vsub.f32 1.0, %v1539_v56  ;;  %v4767_v55 = vrot.slane %v3710_v2, 7 }
 0x10d   : > { %v1113_v24 = vrot.slane %v3926_v31, 1  ;;  %v2414_v3 = vmul.f32 -1.702, %v3919_v60  ;;  %v991_v36 = vsel %vm987_vm8, %v980_v57, %v981_v14  ;;  %2762 = vpow2.f32 %v1380_v25 }
 0x10e   : > { %v4768_v47 = vrot.slane %v3696_v0, 7  ;;  %v4769_v59 = vrot.slane %v3750_v23, 1  ;;  %v1096_v5 = vmul.f32 %v3921_v26, %v991_v36  ;;  %v1267_v56 = vpop.f32.mrf.mxu0  ;;  %v3952_v57 = vmul.f32 1.442695, %v2417_v27 }
 0x10f   : > { %v3954_v31 = vadd.f32 %v1278_v34, %v1219_v44  ;;  %v4770_v2 = vrot.slane %v3662_v41, 1  ;;  %v1119_v25 = vsel %vm1116_vm9, %v1112_v32, %v1113_v24  ;;  %v2424_v23 = vmul.f32 -1.702, %v3924_v49 }
 0x110   : > { %v996_v28 = vsel %vm987_vm8, %v4768_v47, %v4767_v55  ;;  %v1129_v50 = vsel %vm1116_vm9, %v4769_v59, %v1103_v4  ;;  %v3963_v55 = vpop.permute.xlu1 %1071  ;;  %v1225_v36 = vmul.f32 %v3939_v7, %v1119_v25  ;;  %v1293_v47 = vadd.f32 %v1292_v58, %v1096_v5  ;;  %v2626_v58 = vld [vmem:[%s4632_s5 + $0xb8] sm:$0xff]  ;;  %v2625_v7 = vld [vmem:[%s4632_s5 + $0xb0] sm:$0xff] }
 0x111   : > { %v1128_v0 = vsel %vm1116_vm9, %v1103_v4, %v4770_v2  ;;  %4771 = vst [vmem:[#allocation26_spill] sm:$0xff] %v3963_v55  ;;  %v1541_v27 = vmul.f32 %v3904_v12, %v1540_v38  ;;  %v3967_v63 = vpop.eup %2758  ;;  %v3970_v44 = vmul.f32 %v3708_v15, %v996_v28  ;;  %v4772_v41 = vrot.slane %v3719_v62, 1  ;;  %1877 = vmatpush.bf16.msrb.mxu0 %v2626_v58  ;;  %v4010_v25 = vpop.permute.xlu0 %1200 }
 0x112   : > { %v4773_v34 = vrot.slane %v3702_v53, 1  ;;  %v1372_v4 = vmul.f32 1.442695, %v2414_v3  ;;  %v1215_v59 = vmul.f32 %v3668_v11, %v1129_v50  ;;  %v2761_v38 = vpop.eup %2760  ;;  %v1314_v5 = vadd.f32 %v1293_v47, %v1225_v36  ;;  %v3984_v2 = vpop.f32.mrf.mxu3  ;;  %4774 = vst [vmem:[#allocation27_spill] sm:$0xff] %v4010_v25 }
 0x113   : > { %v1268_v28 = vadd.f32 %v1267_v56, %v3869_v30  ;;  %v1216_v62 = vmul.f32 %v3678_v51, %v1128_v0  ;;  %v1554_v53 = vmul.f32 %v3967_v63, %v3907_v10  ;;  %v1294_v3 = vpop.f32.mrf.mxu2  ;;  %vm1544_vm11 = vweird.f32 %v3904_v12  ;;  %v3994_v36 = vpop.eup %2762  ;;  %v2606_v0 = vld [vmem:[%s4632_s5 + $0x18] sm:$0xff] }
 0x114   : > { %v3978_v32 = vsel %vm1116_vm9, %v4773_v34, %v4772_v41  ;;  %v1547_v50 = vand.u32 2147483647, %v3841_v48  ;;  %v1392_v47 = vmul.f32 1.442695, %v2424_v23  ;;  %v3997_v30 = vadd.f32 %v3769_v13, %v1314_v5  ;;  %v3999_v56 = vpop.f32.mrf.mxu1  ;;  %1750 = vmatpush.bf16.msrb.mxu3 %v2606_v0  ;;  %vm4042_vm14 = vmor %vm1543_vm10, %vm1544_vm11 }
 0x115   : > { %v4005_v41 = vadd.f32 %v3904_v12, %v1541_v27  ;;  %v1555_v34 = vsub.f32 1.0, %v1554_v53  ;;  %v4007_v58 = vadd.f32 1.0, %v2761_v38  ;;  %2764 = vpow2.f32 %v1372_v4  ;;  %1878 = vmatpush.bf16.msrb.mxu0 %v2625_v7 }
 0x116   : > { %v4775_v23 = vrot.slane %v3984_v2, 7  ;;  %v1304_v26 = vadd.f32 %v1268_v28, %v1215_v59  ;;  %v1269_v53 = vpop.f32.mrf.mxu0  ;;  %v1564_v38 = vand.u32 2147483648, %v3907_v10  ;;  %v2425_v35 = vmul.f32 -1.702, %v3997_v30 }
 0x117   : > { %v1556_v4 = vmul.f32 %v3967_v63, %v1555_v34  ;;  %v4776_v54 = vrot.slane %v3999_v56, 1  ;;  %vm1559_vm12 = vweird.f32 %v3967_v63  ;;  %vm4030_vm13 = vcmp.eq.f32.partialorder %v1547_v50, 8.507059e+37 }
 0x118   : > { %v990_v5 = vsel %vm987_vm8, %v981_v14, %v4775_v23  ;;  %v1270_v23 = vadd.f32 %v1269_v53, %v3929_v9  ;;  %v1562_v34 = vand.u32 2147483647, %v3907_v10  ;;  %v1549_v9 = vand.u32 2147483648, %v3841_v48 }
 0x119   : > { %v1097_v27 = vmul.f32 %v3963_v55, %v990_v5  ;;  %v1118_v14 = vsel %vm1116_vm9, %v1113_v24, %v4776_v54  ;;  %v2624_v55 = vld [vmem:[%s4632_s5 + $0xa8] sm:$0xff]  ;;  %v1557_v24 = vadd.f32 %v3967_v63, %v1556_v4  ;;  %vm1558_vm15 = vweird.f32 %v3907_v10 }
 0x11a   : > { %v1226_v59 = vmul.f32 %v4010_v25, %v1118_v14  ;;  %v1305_v5 = vadd.f32 %v1270_v23, %v1216_v62  ;;  %2766 = vpow2.f32 %v1392_v47  ;;  %v4050_v7 = vadd.f32 %v3769_v13, %v1304_v26  ;;  %v4052_v62 = vpop.permute.xlu1 %1076  ;;  %v4054_v50 = vpop.f32.mrf.mxu3  ;;  %vm4058_vm0 = vmor %vm1558_vm15, %vm1559_vm12  ;;  %v2588_v4 = vld [vmem:[%s4633_s6 + $0x8] sm:$0xff]  ;;  %v2614_v14 = vld [vmem:[%s4632_s5 + $0x58] sm:$0xff]  ;;  %1879 = vmatpush.bf16.msrb.mxu0 %v2624_v55 }
 0x11b   : > { %v1295_v28 = vadd.f32 %v1294_v3, %v1097_v27  ;;  %v1565_v48 = vor.u32 1.1754944e-38, %v1564_v38  ;;  %v2765_v53 = vpop.eup %2764  ;;  %2768 = vrcp.f32 %v4007_v58  ;;  %v1394_v10 = vmul.f32 1.442695, %v2425_v35  ;;  %v1297_v26 = vpop.f32.mrf.mxu2  ;;  %v2605_v23 = vld [vmem:[%s4632_s5 + $0x10] sm:$0xff]  ;;  %v2623_v47 = vld [vmem:[%s4632_s5 + $0xa0] sm:$0xff]  ;;  %2165 = vmatpush.bf16.msrb.mxu2 %v2588_v4  ;;  %2074 = vmatpush.bf16.msrb.mxu1 %v2614_v14  ;;  %v2604_v4 = vld [vmem:[%s4632_s5 + $0x8] sm:$0xff] }
 0x11c   : > { %v1546_v35 = vsel %vm4042_vm14, %v3904_v12, %v4005_v41  ;;  %v1561_v55 = vsel %vm4058_vm0, %v3967_v63, %v1557_v24  ;;  %vm1563_vm6 = vcmp.eq.f32.partialorder %v1562_v34, 8.507059e+37  ;;  %v4783_v54 = vrot.slane %v4054_v50, 7  ;;  %1751 = vmatpush.bf16.msrb.mxu3 %v2605_v23  ;;  %v2622_v23 = vld [vmem:[%s4632_s5 + $0x98] sm:$0xff] }
 0x11d   : > { %v1315_v3 = vadd.f32 %v1295_v28, %v1226_v59  ;;  %v966_v59 = vpop.f32.mrf.mxu1  ;;  %v4081_v28 = vadd.f32 %v3769_v13, %v1305_v5  ;;  %v4784_v12 = vrot.slane %v3984_v2, 7  ;;  %v2613_v5 = vld [vmem:[%s4632_s5 + $0x50] sm:$0xff]  ;;  %v1550_v63 = vor.u32 1.1754944e-38, %v1549_v9  ;;  %v4113_v9 = vpop.permute.xlu0 %1205 }
 0x11e   : > { %v1115_v25 = vrot.slane %v966_v59, 1  ;;  %v1566_v34 = vsel %vm1563_vm6, %v1565_v48, %v1561_v55  ;;  %v4101_v24 = vadd.f32 1.0, %v2765_v53  ;;  %v2415_v27 = vmul.f32 -1.702, %v4050_v7  ;;  %1880 = vmatpush.bf16.msrb.mxu0 %v2623_v47 }
 0x11f   : > { %v4078_v38 = vadd.f32 %v3769_v13, %v1315_v3  ;;  %v989_v41 = vsel %vm987_vm8, %v4784_v12, %v4783_v54  ;;  %v2587_v3 = vld [vmem:[%s4633_s6] sm:$0xff]  ;;  %v4111_v14 = vadd.f32 %v3769_v13, %v3954_v31  ;;  %2770 = vpow2.f32 %v1394_v10  ;;  %2075 = vmatpush.bf16.msrb.mxu1 %v2613_v5 }
 0x120   : > { %v1098_v59 = vmul.f32 %v4052_v62, %v989_v41  ;;  %v4785_v48 = vrot.slane %v3999_v56, 1  ;;  %v1551_v55 = vsel %vm4030_vm13, %v1550_v63, %v1546_v35  ;;  %v2767_v54 = vpop.eup %2766  ;;  %v2416_v31 = vmul.f32 -1.702, %v4081_v28  ;;  %2166 = vmatpush.bf16.msrb.mxu2 %v2587_v3  ;;  %v2612_v35 = vld [vmem:[%s4632_s5 + $0x48] sm:$0xff]  ;;  %1752 = vmatpush.bf16.msrb.mxu3 %v2604_v4  ;;  %v4150_v3 = vpop.permute.xlu2 %1081 }
 0x121   : > { %v2426_v2 = vmul.f32 -1.702, %v4078_v38  ;;  %v1667_v41 = vmul.f32 %v1566_v34, %v3815_v42  ;;  %v4127_v56 = vpop.eup %2768  ;;  %2772 = vpow2.f32 %v3952_v57  ;;  %v1220_v47 = vmul.f32 %v3712_v33, %v3978_v32 }
 0x122   : > { %v1117_v53 = vsel %vm1116_vm9, %v4785_v48, %v1115_v25  ;;  %v1280_v48 = vadd.f32 %v3714_v17, %v3970_v44  ;;  %v1298_v0 = vadd.f32 %v1297_v26, %v1098_v59  ;;  %v4786_v63 = vrot.slane %v3721_v18, 1  ;;  %v875_v34 = vpop.f32.mrf.mxu3  ;;  %v2603_v17 = vld [vmem:[%s4632_s5] sm:$0xff]  ;;  %1881 = vmatpush.bf16.msrb.mxu0 %v2622_v23  ;;  %v4155_v59 = vpop.permute.xlu1 %1210 }
 0x123   : > { %v1396_v12 = vmul.f32 1.442695, %v2426_v2  ;;  %v1227_v10 = vmul.f32 %v4113_v9, %v1117_v53  ;;  %v4787_v42 = vrot.slane %v3704_v52, 1  ;;  %2774 = vrcp.f32 %v4101_v24  ;;  %2573 = vmatmul.msk.bf16.vlgmr.msrb.gmra.mxu2 %vm4733_vm1, %v3294_v1  ;;  %2076 = vmatpush.bf16.msrb.mxu1 %v2612_v35  ;;  %v2620_v35 = vld [vmem:[%s4632_s5 + $0x88] sm:$0xff] }
 0x124   : > { %v1374_v32 = vmul.f32 1.442695, %v2415_v27  ;;  %v1666_v44 = vmul.f32 %v1551_v55, %v3778_v45  ;;  %v4148_v26 = vadd.f32 1.0, %v2767_v54  ;;  %v984_v5 = vrot.slane %v875_v34, 7  ;;  %v2621_v27 = vld [vmem:[%s4632_s5 + $0x90] sm:$0xff]  ;;  %1753 = vmatpush.bf16.msrb.mxu3 %v2603_v17 }
 0x125   : > { %v1131_v57 = vsel %vm1116_vm9, %v4787_v42, %v4786_v63  ;;  %2776 = vpow2.f32 %v1396_v12  ;;  %v1316_v18 = vadd.f32 %v1298_v0, %v1227_v10  ;;  %v1376_v2 = vmul.f32 1.442695, %v2416_v31  ;;  %v2771_v55 = vpop.eup %2770  ;;  %v1299_v10 = vpop.f32.mrf.mxu2 }
 0x126   : > { %v4788_v4 = vmov %v4787_v42  ;;  %v4163_v53 = vpack.c.bf16 %v1667_v41, %v1666_v44  ;;  %v1569_v23 = vmul.f32 %v4127_v56, %v4007_v58  ;;  %v1309_v54 = vadd.f32 %v1280_v48, %v1220_v47  ;;  %v2611_v41 = vld [vmem:[%s4632_s5 + $0x40] sm:$0xff]  ;;  %1882 = vmatpush.bf16.msrb.mxu0 %v2621_v27 }
 0x127   : > { %v1132_v45 = vsel %vm1116_vm9, %v1115_v25, %v4788_v4  ;;  %v4168_v12 = vadd.f32 %v3769_v13, %v1316_v18  ;;  %v4789_v31 = vrot.slane %v3658_v29, 7  ;;  %v4790_v25 = vrot.slane %v4054_v50, 7  ;;  %v2773_v29 = vpop.eup %2772  ;;  %2077 = vmatpush.bf16.msrb.mxu1 %v2611_v41 }
 0x128   : > { %2778 = vpow2.f32 %v1374_v32  ;;  %v1213_v0 = vmul.f32 %v3654_v39, %v1131_v57  ;;  %v1228_v50 = vmul.f32 %v4155_v59, %v1132_v45  ;;  %v1570_v17 = vsub.f32 1.0, %v1569_v23 }
 0x129   : > { %v1003_v52 = vsel %vm987_vm8, %v984_v5, %v4789_v31  ;;  %v988_v1 = vsel %vm987_vm8, %v4790_v25, %v984_v5  ;;  %2780 = vrcp.f32 %v4148_v26  ;;  %v2427_v63 = vmul.f32 -1.702, %v4168_v12  ;;  %v4190_v42 = vpop.eup %2774 }
 0x12a   : > { %v1084_v47 = vmul.f32 %v3652_v19, %v1003_v52  ;;  %v1099_v48 = vmul.f32 %v4150_v3, %v988_v1  ;;  %2782 = vpow2.f32 %v1376_v2  ;;  %v2419_v57 = vmul.f32 -1.702, %v4111_v14  ;;  %1883 = vmatpush.bf16.msrb.mxu0 %v2620_v35 }
 0x12b   : > { %v2777_v44 = vpop.eup %2776  ;;  %v4195_v18 = vadd.f32 %v3769_v13, %v1309_v54  ;;  %v4197_v5 = vadd.f32 1.0, %v2771_v55  ;;  %v1398_v27 = vmul.f32 1.442695, %v2427_v63  ;;  %v1434_v2 = vmul.f32 %v4190_v42, %v4101_v24 }
 0x12c   : > { %v1263_v32 = vadd.f32 %v3826_v46, %v1084_v47  ;;  %v1300_v34 = vadd.f32 %v1299_v10, %v1099_v48  ;;  %v4199_v31 = vadd.f32 1.0, %v2777_v44  ;;  %v2619_v46 = vld [vmem:[%s4632_s5 + $0x80] sm:$0xff]  ;;  %v1571_v52 = vmul.f32 %v4127_v56, %v1570_v17 }
 0x12d   : > { %2784 = vpow2.f32 %v1398_v27  ;;  %v4215_v1 = vmul.f32 1.442695, %v2419_v57  ;;  %v2420_v10 = vmul.f32 -1.702, %v4195_v18  ;;  %v4220_v47 = vadd.f32 1.0, %v3994_v36 }
 0x12e   : > { %v1317_v4 = vadd.f32 %v1300_v34, %v1228_v50  ;;  %v1302_v45 = vadd.f32 %v1263_v32, %v1213_v0  ;;  %v2779_v23 = vpop.eup %2778  ;;  %2786 = vrcp.f32 %v4197_v5  ;;  %v4222_v48 = vadd.f32 1.0, %v2773_v29  ;;  %1884 = vmatpush.bf16.msrb.mxu0 %v2619_v46 }
 0x12f   : > { %v4213_v25 = vpop.eup %2780  ;;  %v4226_v50 = vadd.f32 1.0, %v2779_v23  ;;  %2788 = vrcp.f32 %v4199_v31  ;;  %v1435_v63 = vsub.f32 1.0, %v1434_v2  ;;  %vm1574_vm3 = vweird.f32 %v4127_v56 }
 0x130   : > { %v4207_v54 = vadd.f32 %v3769_v13, %v1317_v4  ;;  %v4210_v55 = vadd.f32 %v3769_v13, %v1302_v45  ;;  %v2783_v41 = vpop.eup %2782  ;;  %v1572_v34 = vadd.f32 %v4127_v56, %v1571_v52  ;;  %v1584_v36 = vmul.f32 %v4213_v25, %v4148_v26 }
 0x131   : > { %v4233_v17 = vmul.f32 1.442695, %v2420_v10  ;;  %v4235_v44 = vadd.f32 1.0, %v2783_v41  ;;  %v1442_v57 = vand.u32 2147483647, %v4101_v24  ;;  %v1579_v27 = vand.u32 2147483648, %v4007_v58 }
 0x132   : > { %v2428_v0 = vmul.f32 -1.702, %v4207_v54  ;;  %v2413_v13 = vmul.f32 -1.702, %v4210_v55  ;;  %vm1573_vm2 = vweird.f32 %v4007_v58  ;;  %v1577_v4 = vand.u32 2147483647, %v4007_v58 }
 0x133   : > { %v2785_v29 = vpop.eup %2784  ;;  %v1585_v45 = vsub.f32 1.0, %v1584_v36  ;;  %v1436_v23 = vmul.f32 %v4190_v42, %v1435_v63  ;;  %vm1439_vm4 = vweird.f32 %v4190_v42  ;;  %vm4249_vm5 = vmor %vm1573_vm2, %vm1574_vm3  ;;  %2574 = vmatmul.msk.bf16.gmra.mxu2 %vm4793_vm7, %v3400_v6  ;;  %vm1589_vm10 = vweird.f32 %v4213_v25 }
 0x134   : > { %v1400_v35 = vmul.f32 1.442695, %v2428_v0  ;;  %v1370_v32 = vmul.f32 1.442695, %v2413_v13  ;;  %v4241_v46 = vpop.eup %2786  ;;  %v4243_v2 = vadd.f32 1.0, %v2785_v29  ;;  %v1576_v58 = vsel %vm4249_vm5, %v4127_v56, %v1572_v34 }
 0x135   : > { %v1586_v10 = vmul.f32 %v4213_v25, %v1585_v45  ;;  %v4261_v41 = vpop.eup %2788  ;;  %v1580_v0 = vor.u32 1.1754944e-38, %v1579_v27  ;;  %v1592_v13 = vand.u32 2147483647, %v4148_v26  ;;  %v1594_v63 = vand.u32 2147483648, %v4148_v26 }
 0x136   : > { %2790 = vpow2.f32 %v1400_v35  ;;  %vm1578_vm11 = vcmp.eq.f32.partialorder %v1577_v4, 8.507059e+37  ;;  %vm1588_vm12 = vweird.f32 %v4148_v26  ;;  %v1599_v56 = vmul.f32 %v4241_v46, %v4197_v5 }
 0x137   : > { %2792 = vpow2.f32 %v1370_v32  ;;  %v1587_v6 = vadd.f32 %v4213_v25, %v1586_v10  ;;  %v1437_v35 = vadd.f32 %v4190_v42, %v1436_v23  ;;  %v1581_v32 = vsel %vm1578_vm11, %v1580_v0, %v1576_v58  ;;  %vm1590_vm13 = vmor %vm1588_vm12, %vm1589_vm10 }
 0x138   : > { %2794 = vrcp.f32 %v4226_v50  ;;  %v1595_v34 = vor.u32 1.1754944e-38, %v1594_v63  ;;  %vm1593_vm14 = vcmp.eq.f32.partialorder %v1592_v13, 8.507059e+37  ;;  %v1600_v27 = vsub.f32 1.0, %v1599_v56 }
 0x139   : > { %2796 = vrcp.f32 %v4235_v44  ;;  %v1591_v29 = vsel %vm1590_vm13, %v4213_v25, %v1587_v6  ;;  %v1614_v4 = vmul.f32 %v4261_v41, %v4199_v31  ;;  %vm1438_vm15 = vweird.f32 %v4101_v24 }
 0x13a   : > { %2798 = vrcp.f32 %v4243_v2  ;;  %v1444_v52 = vand.u32 2147483648, %v4101_v24  ;;  %v1596_v10 = vsel %vm1593_vm14, %v1595_v34, %v1591_v29  ;;  %v1601_v25 = vmul.f32 %v4241_v46, %v1600_v27  ;;  %vm4291_vm0 = vmor %vm1438_vm15, %vm1439_vm4 }
 0x13b   : > { %v1669_v0 = vmul.f32 %v1596_v10, %v3924_v49  ;;  %v1609_v13 = vand.u32 2147483648, %v4197_v5  ;;  %v1668_v24 = vmul.f32 %v1581_v32, %v3863_v43  ;;  %vm1604_vm6 = vweird.f32 %v4241_v46 }
 0x13c   : > { %v2791_v36 = vpop.eup %2790  ;;  %v1615_v56 = vsub.f32 1.0, %v1614_v4  ;;  %v1441_v49 = vsel %vm4291_vm0, %v4190_v42, %v1437_v35  ;;  %vm4301_vm1 = vcmp.eq.f32.partialorder %v1442_v57, 8.507059e+37  ;;  %v1602_v43 = vadd.f32 %v4241_v46, %v1601_v25 }
 0x13d   : > { %v2793_v45 = vpop.eup %2792  ;;  %v4275_v26 = vadd.f32 1.0, %v2791_v36  ;;  %v1607_v36 = vand.u32 2147483647, %v4197_v5  ;;  %v4308_v27 = vpack.c.bf16 %v1669_v0, %v1668_v24  ;;  %vm1603_vm3 = vweird.f32 %v4197_v5 }
 0x13e   : > { %v4279_v23 = vpop.eup %2794  ;;  %v4281_v58 = vadd.f32 1.0, %v2793_v45  ;;  %v1616_v32 = vmul.f32 %v4261_v41, %v1615_v56  ;;  %v1445_v4 = vor.u32 1.1754944e-38, %v1444_v52  ;;  %vm4313_vm2 = vmor %vm1603_vm3, %vm1604_vm6  ;;  %v1610_v42 = vor.u32 1.1754944e-38, %v1609_v13 }
 0x13f   : > { %v4286_v63 = vpop.eup %2796  ;;  %2800 = vrcp.f32 %v4275_v26  ;;  %vm1618_vm4 = vweird.f32 %v4199_v31  ;;  %vm1619_vm5 = vweird.f32 %v4261_v41  ;;  %v1606_v57 = vsel %vm4313_vm2, %v4241_v46, %v1602_v43 }
 0x140   : > { %2802 = vrcp.f32 %v4281_v58  ;;  %v4306_v29 = vpop.eup %2798  ;;  %v1617_v35 = vadd.f32 %v4261_v41, %v1616_v32  ;;  %v1622_v5 = vand.u32 2147483647, %v4199_v31  ;;  %v1624_v10 = vand.u32 2147483648, %v4199_v31  ;;  %vm1620_vm10 = vmor %vm1618_vm4, %vm1619_vm5 }
 0x141   : > { %v1446_v52 = vsel %vm4301_vm1, %v1445_v4, %v1441_v49  ;;  %v4329_v0 = vmul.f32 %v4279_v23, %v4226_v50  ;;  %vm1608_vm7 = vcmp.eq.f32.partialorder %v1607_v36, 8.507059e+37  ;;  %v1629_v25 = vmul.f32 %v4306_v29, %v4243_v2 }
 0x142   : > { %v1464_v46 = vmul.f32 %v4286_v63, %v4235_v44  ;;  %v1611_v6 = vsel %vm1608_vm7, %v1610_v42, %v1606_v57  ;;  %v1621_v24 = vsel %vm1620_vm10, %v4261_v41, %v1617_v35  ;;  %v1625_v31 = vor.u32 1.1754944e-38, %v1624_v10 }
 0x143   : > { %v1427_v49 = vand.u32 2147483647, %v4281_v58  ;;  %vm1623_vm11 = vcmp.eq.f32.partialorder %v1622_v5, 8.507059e+37  ;;  %v1630_v34 = vsub.f32 1.0, %v1629_v25  ;;  %v1429_v32 = vand.u32 2147483648, %v4281_v58 }
 0x144   : > { %v1626_v4 = vsel %vm1623_vm11, %v1625_v31, %v1621_v24  ;;  %vm1634_vm12 = vweird.f32 %v4306_v29  ;;  %vm4800_vm13 = vcmask 523264   ;;  %v1670_v41 = vmul.f32 %v1611_v6, %v3997_v30 }
 0x145   : > { %v2801_v13 = vpop.eup %2800  ;;  %2575 = vmatmul.msk.bf16.gmra.mxu2 %vm4800_vm13, %v3327_v16  ;;  %v1671_v45 = vmul.f32 %v1626_v4, %v4078_v38  ;;  %v1631_v42 = vmul.f32 %v4306_v29, %v1630_v34  ;;  %v1639_v57 = vand.u32 2147483648, %v4243_v2  ;;  %vm1633_vm14 = vweird.f32 %v4243_v2 }
 0x146   : > { %v2803_v56 = vpop.eup %2802  ;;  %v1644_v43 = vmul.f32 %v2801_v13, %v4275_v26  ;;  %v1637_v5 = vand.u32 2147483647, %v4243_v2  ;;  %v1654_v16 = vand.u32 2147483648, %v4275_v26  ;;  %vm4355_vm0 = vmor %vm1633_vm14, %vm1634_vm12  ;;  %vm1649_vm6 = vweird.f32 %v2801_v13 }
 0x147   : > { %v1419_v36 = vmul.f32 %v2803_v56, %v4281_v58  ;;  %vm1424_vm15 = vweird.f32 %v2803_v56  ;;  %v4349_v25 = vpack.c.bf16 %v1671_v45, %v1670_v41  ;;  %v1632_v24 = vadd.f32 %v4306_v29, %v1631_v42 }
 0x148   : > { %v1645_v10 = vsub.f32 1.0, %v1644_v43  ;;  %v1652_v31 = vand.u32 2147483647, %v4275_v26  ;;  %vm1423_vm1 = vweird.f32 %v4281_v58  ;;  %v1465_v2 = vsub.f32 1.0, %v1464_v46 }
 0x149   : > { %v1420_v35 = vsub.f32 1.0, %v1419_v36  ;;  %v1636_v34 = vsel %vm4355_vm0, %v4306_v29, %v1632_v24  ;;  %v1640_v43 = vor.u32 1.1754944e-38, %v1639_v57  ;;  %vm1425_vm3 = vmor %vm1423_vm1, %vm1424_vm15  ;;  %vm1638_vm2 = vcmp.eq.f32.partialorder %v1637_v5, 8.507059e+37 }
 0x14a   : > { %v1646_v6 = vmul.f32 %v2801_v13, %v1645_v10  ;;  %vm1648_vm4 = vweird.f32 %v4275_v26  ;;  %v1430_v41 = vor.u32 1.1754944e-38, %v1429_v32  ;;  %v1450_v45 = vsub.f32 1.0, %v4329_v0 }
 0x14b   : > { %v1421_v30 = vmul.f32 %v2803_v56, %v1420_v35  ;;  %v1641_v42 = vsel %vm1638_vm2, %v1640_v43, %v1636_v34  ;;  %vm1650_vm5 = vmor %vm1648_vm4, %vm1649_vm6  ;;  %v1655_v35 = vor.u32 1.1754944e-38, %v1654_v16  ;;  %vm1428_vm7 = vcmp.eq.f32.partialorder %v1427_v49, 8.507059e+37 }
 0x14c   : > { %v1647_v4 = vadd.f32 %v2801_v13, %v1646_v6  ;;  %vm1653_vm10 = vcmp.eq.f32.partialorder %v1652_v31, 8.507059e+37  ;;  %2804 = vrcp.f32 %v4222_v48  ;;  %v1659_v46 = vmul.f32 %v1446_v52, %v3919_v60 }
 0x14d   : > { %v1422_v36 = vadd.f32 %v2803_v56, %v1421_v30  ;;  %v1466_v26 = vmul.f32 %v4286_v63, %v1465_v2  ;;  %v1672_v32 = vmul.f32 %v1641_v42, %v4168_v12  ;;  %2806 = vrcp.f32 %v4220_v47 }
 0x14e   : > { %v1651_v58 = vsel %vm1650_vm5, %v2801_v13, %v1647_v4  ;;  %2808 = vpow2.f32 %v4233_v17  ;;  %vm1469_vm11 = vweird.f32 %v4286_v63  ;;  %vm1454_vm12 = vweird.f32 %v4279_v23 }
 0x14f   : > { %v1426_v10 = vsel %vm1425_vm3, %v2803_v56, %v1422_v36  ;;  %v1656_v57 = vsel %vm1653_vm10, %v1655_v35, %v1651_v58  ;;  %v1451_v56 = vmul.f32 %v4279_v23, %v1450_v45  ;;  %2810 = vpow2.f32 %v4215_v1 }
 0x150   : > { %v1431_v29 = vsel %vm1428_vm7, %v1430_v41, %v1426_v10  ;;  %v1673_v0 = vmul.f32 %v1656_v57, %v4207_v54  ;;  %v1467_v60 = vadd.f32 %v4286_v63, %v1466_v26  ;;  %v1474_v54 = vand.u32 2147483648, %v4235_v44 }
 0x151   : > { %v1658_v5 = vmul.f32 %v1431_v29, %v4210_v55  ;;  %v1452_v55 = vadd.f32 %v4279_v23, %v1451_v56  ;;  %vm1468_vm13 = vweird.f32 %v4235_v44  ;;  %v1472_v17 = vand.u32 2147483647, %v4235_v44 }
 0x152   : > { %v4375_v49 = vpack.c.bf16 %v1673_v0, %v1672_v32  ;;  %v4380_v12 = vpop.eup %2804  ;;  %v1459_v52 = vand.u32 2147483648, %v4226_v50  ;;  %vm4388_vm14 = vmor %vm1468_vm13, %vm1469_vm11  ;;  %vm4805_vm15 = vcmask 523264   ;;  %vm1453_vm0 = vweird.f32 %v4226_v50 }
 0x153   : > { %v1674_v13 = vpack.c.bf16 %v1659_v46, %v1658_v5  ;;  %v2807_v1 = vpop.eup %2806  ;;  %v1457_v30 = vand.u32 2147483647, %v4226_v50  ;;  %v1471_v38 = vsel %vm4388_vm14, %v4286_v63, %v1467_v60  ;;  %v1479_v44 = vmul.f32 %v4380_v12, %v4222_v48  ;;  %vm1455_vm6 = vmor %vm1453_vm0, %vm1454_vm12 }
 0x154   : > { %v2809_v16 = vpop.eup %2808  ;;  %v1475_v6 = vor.u32 1.1754944e-38, %v1474_v54  ;;  %v1456_v2 = vsel %vm1455_vm6, %v4279_v23, %v1452_v55  ;;  %vm1473_vm1 = vcmp.eq.f32.partialorder %v1472_v17, 8.507059e+37  ;;  %v1460_v43 = vor.u32 1.1754944e-38, %v1459_v52  ;;  %vm4806_vm10 = vmmov %vm4805_vm15  ;;  %v4807_v52 = vld [vmem:[#allocation21_spill] sm:$0xff] }
 0x155   : > { %1754 = vmatmul.bf16.vlgmr.msrb.gmra.mxu3 %v1674_v13  ;;  %1885 = vmatmul.bf16.vlgmr.msrb.gmra.mxu0 %v1674_v13  ;;  %v2811_v31 = vpop.eup %2810  ;;  %v4403_v34 = vadd.f32 1.0, %v2809_v16  ;;  %vm1458_vm3 = vcmp.eq.f32.partialorder %v1457_v30, 8.507059e+37  ;;  %v1480_v50 = vsub.f32 1.0, %v1479_v44  ;;  %vm1484_vm2 = vweird.f32 %v4380_v12 }
 0x156   : > { %2078 = vmatmul.bf16.vlgmr.msrb.gmra.mxu1 %v1674_v13  ;;  %2576 = vmatmul.msk.bf16.gmra.mxu2 %vm4805_vm15, %v3452_v40  ;;  %v1494_v40 = vmul.f32 %v2807_v1, %v4220_v47  ;;  %v1476_v36 = vsel %vm1473_vm1, %v1475_v6, %v1471_v38  ;;  %v4405_v4 = vadd.f32 1.0, %v2811_v31  ;;  %v1461_v63 = vsel %vm1458_vm3, %v1460_v43, %v1456_v2  ;;  %v4808_v31 = vld [vmem:[#allocation5_spill] sm:$0xff]  ;;  %vm4809_vm3 = vmmov %vm4806_vm10 }
 0x157   : > { %v1661_v41 = vmul.f32 %v1476_v36, %v4081_v28  ;;  %2812 = vrcp.f32 %v4403_v34  ;;  %v1660_v42 = vmul.f32 %v1461_v63, %v4050_v7  ;;  %v1481_v23 = vmul.f32 %v4380_v12, %v1480_v50 }
 0x158   : > { %v1495_v45 = vsub.f32 1.0, %v1494_v40  ;;  %2814 = vrcp.f32 %v4405_v4  ;;  %v1489_v28 = vand.u32 2147483648, %v4222_v48  ;;  %vm1483_vm4 = vweird.f32 %v4222_v48 }
 0x159   : > { %v1675_v35 = vpack.c.bf16 %v1661_v41, %v1660_v42  ;;  %v1482_v58 = vadd.f32 %v4380_v12, %v1481_v23  ;;  %v1487_v7 = vand.u32 2147483647, %v4222_v48  ;;  %vm1499_vm5 = vweird.f32 %v2807_v1  ;;  %vm1485_vm7 = vmor %vm1483_vm4, %vm1484_vm2  ;;  %v4810_v23 = vld [vmem:[#allocation6_spill] sm:$0xff] }
 0x15a   : > { %v1496_v10 = vmul.f32 %v2807_v1, %v1495_v45  ;;  %v1504_v5 = vand.u32 2147483648, %v4220_v47  ;;  %vm1498_vm11 = vweird.f32 %v4220_v47  ;;  %v1502_v32 = vand.u32 2147483647, %v4220_v47 }
 0x15b   : > { %v1486_v26 = vsel %vm1485_vm7, %v4380_v12, %v1482_v58  ;;  %v1490_v13 = vor.u32 1.1754944e-38, %v1489_v28  ;;  %vm1500_vm12 = vmor %vm1498_vm11, %vm1499_vm5  ;;  %vm1488_vm13 = vcmp.eq.f32.partialorder %v1487_v7, 8.507059e+37  ;;  %vm1528_vm6 = vweird.f32 %v4403_v34 }
 0x15c   : > { %v1497_v46 = vadd.f32 %v2807_v1, %v1496_v10  ;;  %v1505_v54 = vor.u32 1.1754944e-38, %v1504_v5  ;;  %vm1503_vm14 = vcmp.eq.f32.partialorder %v1502_v32, 8.507059e+37  ;;  %v1532_v6 = vand.u32 2147483647, %v4403_v34  ;;  %vm4813_vm11 = vmmov %vm4809_vm3 }
 0x15d   : > { %v2813_v29 = vpop.eup %2812  ;;  %v1491_v60 = vsel %vm1488_vm13, %v1490_v13, %v1486_v26  ;;  %vm1513_vm2 = vweird.f32 %v4405_v4  ;;  %v1517_v2 = vand.u32 2147483647, %v4405_v4 }
 0x15e   : > { %v2815_v57 = vpop.eup %2814  ;;  %v1524_v0 = vmul.f32 %v2813_v29, %v4403_v34  ;;  %v1501_v48 = vsel %vm1500_vm12, %v2807_v1, %v1497_v46  ;;  %vm1529_vm15 = vweird.f32 %v2813_v29  ;;  %v1534_v1 = vand.u32 2147483648, %v4403_v34 }
 0x15f   : > { %v1509_v56 = vmul.f32 %v2815_v57, %v4405_v4  ;;  %v1506_v17 = vsel %vm1503_vm14, %v1505_v54, %v1501_v48  ;;  %vm1514_vm0 = vweird.f32 %v2815_v57  ;;  %vm1530_vm1 = vmor %vm1528_vm6, %vm1529_vm15  ;;  %vm1533_vm5 = vcmp.eq.f32.partialorder %v1532_v6, 8.507059e+37  ;;  %v4814_v48 = vld [vmem:[#allocation8_spill] sm:$0xff] }
 0x160   : > { %v1525_v55 = vsub.f32 1.0, %v1524_v0  ;;  %v1663_v24 = vmul.f32 %v1506_v17, %v4807_v52  ;;  %vm1515_vm4 = vmor %vm1513_vm2, %vm1514_vm0  ;;  %v1535_v43 = vor.u32 1.1754944e-38, %v1534_v1  ;;  %vm1518_vm7 = vcmp.eq.f32.partialorder %v1517_v2, 8.507059e+37  ;;  %v4815_v1 = vld [vmem:[#allocation9_spill] sm:$0xff] }
 0x161   : > { %v1510_v12 = vsub.f32 1.0, %v1509_v56 }
 0x162   : > { %v1526_v16 = vmul.f32 %v2813_v29, %v1525_v55 }
 0x163   : > { %v1511_v30 = vmul.f32 %v2815_v57, %v1510_v12 }
 0x164   : > { %v1527_v38 = vadd.f32 %v2813_v29, %v1526_v16 }
 0x165   : > { %1759 = vmatmul.bf16.gmra.mxu3 %v1675_v35  ;;  %1890 = vmatmul.bf16.gmra.mxu0 %v1675_v35  ;;  %v1512_v44 = vadd.f32 %v2815_v57, %v1511_v30 }
 0x166   : > { %2083 = vmatmul.bf16.gmra.mxu1 %v1675_v35  ;;  %2577 = vmatmul.msk.bf16.gmra.mxu2 %vm4806_vm10, %v3508_v61  ;;  %v1662_v61 = vmul.f32 %v1491_v60, %v3886_v37  ;;  %v1519_v37 = vand.u32 2147483648, %v4405_v4  ;;  %v1531_v40 = vsel %vm1530_vm1, %v2813_v29, %v1527_v38  ;;  %vm4811_vm10 = vmmov %vm4809_vm3  ;;  %v4812_v4 = vld [vmem:[#allocation7_spill] sm:$0xff] }
 0x167   : > { %v1516_v36 = vsel %vm1515_vm4, %v2815_v57, %v1512_v44  ;;  %v1536_v63 = vsel %vm1533_vm5, %v1535_v43, %v1531_v40 }
 0x168   : > { %v1676_v47 = vpack.c.bf16 %v1663_v24, %v1662_v61  ;;  %v1520_v50 = vor.u32 1.1754944e-38, %v1519_v37  ;;  %v1665_v34 = vmul.f32 %v1536_v63, %v4195_v18 }
 0x16a   : > { %v1521_v41 = vsel %vm1518_vm7, %v1520_v50, %v1516_v36 }
 0x16b   : > { %v1664_v45 = vmul.f32 %v1521_v41, %v4111_v14 }
 0x16d   : > { %v1677_v42 = vpack.c.bf16 %v1665_v34, %v1664_v45 }
 0x175   : > { %1764 = vmatmul.bf16.gmra.mxu3 %v1676_v47  ;;  %1895 = vmatmul.bf16.gmra.mxu0 %v1676_v47 }
 0x176   : > { %2088 = vmatmul.bf16.gmra.mxu1 %v1676_v47  ;;  %2578 = vmatmul.msk.bf16.gmra.mxu2 %vm4809_vm3, %v4808_v31 }
 0x185   : > { %1769 = vmatmul.bf16.gmra.mxu3 %v1677_v42  ;;  %1900 = vmatmul.bf16.gmra.mxu0 %v1677_v42 }
 0x186   : > { %2093 = vmatmul.bf16.gmra.mxu1 %v1677_v42  ;;  %2579 = vmatmul.msk.bf16.gmra.mxu2 %vm4811_vm10, %v4810_v23 }
 0x195   : > { %1774 = vmatmul.bf16.gmra.mxu3 %v4163_v53  ;;  %1905 = vmatmul.bf16.gmra.mxu0 %v4163_v53 }
 0x196   : > { %2098 = vmatmul.bf16.gmra.mxu1 %v4163_v53  ;;  %2580 = vmatmul.msk.bf16.gmra.mxu2 %vm4813_vm11, %v4812_v4 }
 0x1a5   : > { %1779 = vmatmul.bf16.gmra.mxu3 %v4308_v27  ;;  %1910 = vmatmul.bf16.gmra.mxu0 %v4308_v27 }
 0x1a6   : > { %2103 = vmatmul.bf16.gmra.mxu1 %v4308_v27  ;;  %v4450_v14 = vpop.f32.mrf.mxu2 }
 0x1ae   : > { %v2170_v53 = vpop.f32.mrf.mxu2 }
 0x1b5   : > { %1784 = vmatmul.bf16.gmra.mxu3 %v4349_v25  ;;  %1915 = vmatmul.bf16.gmra.mxu0 %v4349_v25 }
 0x1b6   : > { %2108 = vmatmul.bf16.gmra.mxu1 %v4349_v25  ;;  %v2173_v27 = vpop.f32.mrf.mxu2 }
 0x1be   : > { %v2175_v5 = vpop.f32.mrf.mxu2 }
 0x1c5   : > { %1789 = vmatmul.bf16.gmra.mxu3 %v4375_v49  ;;  %1920 = vmatmul.bf16.gmra.mxu0 %v4375_v49 }
 0x1c6   : > { %2113 = vmatmul.bf16.gmra.mxu1 %v4375_v49 }
 0x1c8   : > { %v2178_v38 = vpop.f32.mrf.mxu2 }
 0x1d0   : > { %v2180_v42 = vpop.f32.mrf.mxu2 }
 0x1d2   : > { %v4455_v18 = vpop.f32.mrf.mxu0 }
 0x1d3   : > { %v4457_v35 = vpop.f32.mrf.mxu1  ;;  %v1974_v25 = vrot.slane %v4455_v18, 1 }
 0x1d8   : > { %v4459_v10 = vpop.f32.mrf.mxu3 }
 0x1d9   : > { %v1926_v46 = vrot.slane %v4459_v10, 7 }
 0x1da   : > { %v1888_v58 = vpop.f32.mrf.mxu0 }
 0x1db   : > { %v1975_v29 = vrot.slane %v1888_v58, 1  ;;  %v2081_v28 = vpop.f32.mrf.mxu1 }
 0x1dd   : > { %v4466_v49 = vsel %vm1116_vm9, %v1974_v25, %v1975_v29 }
 0x1de   : > { %v2006_v18 = vmul.f32 %v4466_v49, %v3654_v39 }
 0x1e0   : > { %v1757_v7 = vpop.f32.mrf.mxu3 }
 0x1e1   : > { %v1927_v57 = vrot.slane %v1757_v7, 7 }
 0x1e2   : > { %v1891_v26 = vpop.f32.mrf.mxu0 }
 0x1e3   : > { %v1956_v32 = vsel %vm987_vm8, %v1926_v46, %v1927_v57  ;;  %v1976_v0 = vrot.slane %v1891_v26, 1  ;;  %v2084_v13 = vpop.f32.mrf.mxu1 }
 0x1e4   : > { %v1959_v56 = vmul.f32 %v1956_v32, %v4814_v48  ;;  %v2183_v48 = vpop.f32.mrf.mxu2 }
 0x1e5   : > { %v2003_v60 = vsel %vm1116_vm9, %v1975_v29, %v1976_v0 }
 0x1e6   : > { %v2082_v54 = vadd.f32 %v2081_v28, %v1959_v56  ;;  %v2007_v55 = vmul.f32 %v2003_v60, %v3664_v22 }
 0x1e8   : > { %v2120_v17 = vadd.f32 %v2082_v54, %v2007_v55  ;;  %v1760_v61 = vpop.f32.mrf.mxu3 }
 0x1e9   : > { %v1928_v12 = vrot.slane %v1760_v61, 7 }
 0x1ea   : > { %v2171_v52 = vadd.f32 %v2170_v53, %v2120_v17  ;;  %v1893_v24 = vpop.f32.mrf.mxu0 }
 0x1eb   : > { %v1955_v16 = vsel %vm987_vm8, %v1927_v57, %v1928_v12  ;;  %v1977_v47 = vrot.slane %v1893_v24, 1  ;;  %v2086_v30 = vpop.f32.mrf.mxu1 }
 0x1ec   : > { %2209 = vst [vmem:[%s4482_s22 + $0x8] sm:$0xff] %v2171_v52  ;;  %v1960_v44 = vmul.f32 %v1955_v16, %v4815_v1  ;;  %v4818_v52 = vld [vmem:[#allocation10_spill] sm:$0xff] }
 0x1ed   : > { %v2002_v22 = vsel %vm1116_vm9, %v1976_v0, %v1977_v47 }
 0x1ee   : > { %v2085_v6 = vadd.f32 %v2084_v13, %v1960_v44  ;;  %v2008_v37 = vmul.f32 %v2002_v22, %v3668_v11  ;;  %v4817_v13 = vld [vmem:[#allocation12_spill] sm:$0xff] }
 0x1f0   : > { %v2121_v31 = vadd.f32 %v2085_v6, %v2008_v37  ;;  %v1762_v2 = vpop.f32.mrf.mxu3 }
 0x1f1   : > { %v1929_v40 = vrot.slane %v1762_v2, 7 }
 0x1f2   : > { %v2174_v43 = vadd.f32 %v2173_v27, %v2121_v31  ;;  %v1896_v36 = vpop.f32.mrf.mxu0 }
 0x1f3   : > { %v1954_v50 = vsel %vm987_vm8, %v1928_v12, %v1929_v40  ;;  %v1978_v63 = vrot.slane %v1896_v36, 1  ;;  %v2089_v41 = vpop.f32.mrf.mxu1  ;;  %v4820_v36 = vld [vmem:[#allocation13_spill] sm:$0xff] }
 0x1f4   : > { %2210 = vst [vmem:[%s4482_s22 + $0x10] sm:$0xff] %v2174_v43  ;;  %v1961_v34 = vmul.f32 %v1954_v50, %v3676_v20  ;;  %v4816_v20 = vld [vmem:[#allocation11_spill] sm:$0xff] }
 0x1f5   : > { %v2001_v45 = vsel %vm1116_vm9, %v1977_v47, %v1978_v63 }
 0x1f6   : > { %v2087_v23 = vadd.f32 %v2086_v30, %v1961_v34  ;;  %v2009_v11 = vmul.f32 %v2001_v45, %v3678_v51  ;;  %v4819_v30 = vld [vmem:[#allocation14_spill] sm:$0xff] }
 0x1f8   : > { %v2122_v4 = vadd.f32 %v2087_v23, %v2009_v11  ;;  %v1765_v53 = vpop.f32.mrf.mxu3 }
 0x1f9   : > { %v1930_v27 = vrot.slane %v1765_v53, 7 }
 0x1fa   : > { %v2176_v58 = vadd.f32 %v2175_v5, %v2122_v4  ;;  %v1898_v29 = vpop.f32.mrf.mxu0 }
 0x1fb   : > { %v1953_v28 = vsel %vm987_vm8, %v1929_v40, %v1930_v27  ;;  %v1979_v7 = vrot.slane %v1898_v29, 1  ;;  %v2091_v57 = vpop.f32.mrf.mxu1 }
 0x1fc   : > { %2211 = vst [vmem:[%s4482_s22 + $0x18] sm:$0xff] %v2176_v58  ;;  %v1962_v26 = vmul.f32 %v1953_v28, %v4816_v20 }
 0x1fd   : > { %v2000_v32 = vsel %vm1116_vm9, %v1978_v63, %v1979_v7 }
 0x1fe   : > { %v2090_v0 = vadd.f32 %v2089_v41, %v1962_v26  ;;  %v2010_v51 = vmul.f32 %v2000_v32, %v4817_v13 }
 0x200   : > { %v2123_v56 = vadd.f32 %v2090_v0, %v2010_v51  ;;  %v1767_v60 = vpop.f32.mrf.mxu3 }
 0x201   : > { %v1931_v5 = vrot.slane %v1767_v60, 7  ;;  %v4821_v60 = vld [vmem:[#allocation15_spill] sm:$0xff] }
 0x202   : > { %v2179_v54 = vadd.f32 %v2178_v38, %v2123_v56  ;;  %v1901_v55 = vpop.f32.mrf.mxu0  ;;  %v2185_v38 = vpop.f32.mrf.mxu2 }
 0x203   : > { %v1952_v17 = vsel %vm987_vm8, %v1930_v27, %v1931_v5  ;;  %v1980_v61 = vrot.slane %v1901_v55, 1  ;;  %v2094_v12 = vpop.f32.mrf.mxu1 }
 0x204   : > { %2212 = vst [vmem:[%s4482_s22 + $0x20] sm:$0xff] %v2179_v54  ;;  %v1963_v24 = vmul.f32 %v1952_v17, %v4818_v52 }
 0x205   : > { %v1999_v16 = vsel %vm1116_vm9, %v1979_v7, %v1980_v61 }
 0x206   : > { %v2092_v47 = vadd.f32 %v2091_v57, %v1963_v24  ;;  %v2011_v1 = vmul.f32 %v1999_v16, %v4819_v30 }
 0x208   : > { %v2124_v44 = vadd.f32 %v2092_v47, %v2011_v1  ;;  %v1770_v22 = vpop.f32.mrf.mxu3 }
 0x209   : > { %v1932_v6 = vrot.slane %v1770_v22, 7 }
 0x20a   : > { %v2181_v37 = vadd.f32 %v2180_v42, %v2124_v44  ;;  %v1903_v31 = vpop.f32.mrf.mxu0  ;;  %v2188_v29 = vpop.f32.mrf.mxu2  ;;  %v4823_v44 = vld [vmem:[#allocation17_spill] sm:$0xff] }
 0x20b   : > { %v1951_v2 = vsel %vm987_vm8, %v1931_v5, %v1932_v6  ;;  %v1981_v40 = vrot.slane %v1903_v31, 1  ;;  %v2096_v43 = vpop.f32.mrf.mxu1 }
 0x20c   : > { %2213 = vst [vmem:[%s4482_s22 + $0x28] sm:$0xff] %v2181_v37  ;;  %v1964_v50 = vmul.f32 %v1951_v2, %v4820_v36  ;;  %v4824_v37 = vld [vmem:[#allocation18_spill] sm:$0xff] }
 0x20d   : > { %v1998_v63 = vsel %vm1116_vm9, %v1980_v61, %v1981_v40 }
 0x20e   : > { %v2095_v41 = vadd.f32 %v2094_v12, %v1964_v50  ;;  %v2012_v34 = vmul.f32 %v1998_v63, %v3725_v8 }
 0x210   : > { %v2125_v45 = vadd.f32 %v2095_v41, %v2012_v34  ;;  %v1772_v23 = vpop.f32.mrf.mxu3 }
 0x211   : > { %v1933_v11 = vrot.slane %v1772_v23, 7 }
 0x212   : > { %v2184_v42 = vadd.f32 %v2183_v48, %v2125_v45  ;;  %v1906_v4 = vpop.f32.mrf.mxu0  ;;  %v2190_v54 = vpop.f32.mrf.mxu2  ;;  %v4825_v45 = vld [vmem:[#allocation19_spill] sm:$0xff] }
 0x213   : > { %v1950_v53 = vsel %vm987_vm8, %v1932_v6, %v1933_v11  ;;  %v1982_v27 = vrot.slane %v1906_v4, 1  ;;  %v2099_v58 = vpop.f32.mrf.mxu1 }
 0x214   : > { %2214 = vst [vmem:[%s4482_s22 + $0x30] sm:$0xff] %v2184_v42  ;;  %v1965_v28 = vmul.f32 %v1950_v53, %v3708_v15  ;;  %v4826_v53 = vld [vmem:[#allocation20_spill] sm:$0xff] }
 0x215   : > { %v1997_v7 = vsel %vm1116_vm9, %v1981_v40, %v1982_v27 }
 0x216   : > { %v2097_v57 = vadd.f32 %v2096_v43, %v1965_v28  ;;  %v2013_v8 = vmul.f32 %v1997_v7, %v3712_v33  ;;  %v4822_v33 = vld [vmem:[#allocation16_spill] sm:$0xff] }
 0x218   : > { %v2126_v20 = vadd.f32 %v2097_v57, %v2013_v8  ;;  %v1775_v26 = vpop.f32.mrf.mxu3 }
 0x219   : > { %v1934_v32 = vrot.slane %v1775_v26, 7 }
 0x21a   : > { %v2186_v0 = vadd.f32 %v2185_v38, %v2126_v20  ;;  %v1908_v13 = vpop.f32.mrf.mxu0  ;;  %v2193_v2 = vpop.f32.mrf.mxu2 }
 0x21b   : > { %v1949_v51 = vsel %vm987_vm8, %v1933_v11, %v1934_v32  ;;  %v1983_v48 = vrot.slane %v1908_v13, 1  ;;  %v2101_v56 = vpop.f32.mrf.mxu1 }
 0x21c   : > { %2215 = vst [vmem:[%s4482_s22 + $0x38] sm:$0xff] %v2186_v0  ;;  %v1966_v15 = vmul.f32 %v1949_v51, %v4821_v60 }
 0x21d   : > { %v1996_v5 = vsel %vm1116_vm9, %v1982_v27, %v1983_v48 }
 0x21e   : > { %v2100_v55 = vadd.f32 %v2099_v58, %v1966_v15  ;;  %v2014_v17 = vmul.f32 %v1996_v5, %v4822_v33 }
 0x220   : > { %v2127_v61 = vadd.f32 %v2100_v55, %v2014_v17  ;;  %v1777_v12 = vpop.f32.mrf.mxu3 }
 0x221   : > { %v1935_v52 = vrot.slane %v1777_v12, 7 }
 0x222   : > { %v2189_v24 = vadd.f32 %v2188_v29, %v2127_v61  ;;  %v1911_v16 = vpop.f32.mrf.mxu0  ;;  %v2195_v7 = vpop.f32.mrf.mxu2 }
 0x223   : > { %v1948_v47 = vsel %vm987_vm8, %v1934_v32, %v1935_v52  ;;  %v1984_v30 = vrot.slane %v1911_v16, 1  ;;  %v2104_v1 = vpop.f32.mrf.mxu1  ;;  %v4827_v32 = vld [vmem:[#allocation22_spill] sm:$0xff] }
 0x224   : > { %2216 = vst [vmem:[%s4482_s22 + $0x40] sm:$0xff] %v2189_v24  ;;  %v1967_v22 = vmul.f32 %v1948_v47, %v4823_v44 }
 0x225   : > { %v1995_v6 = vsel %vm1116_vm9, %v1983_v48, %v1984_v30  ;;  %v4828_v48 = vld [vmem:[#allocation23_spill] sm:$0xff] }
 0x226   : > { %v2102_v38 = vadd.f32 %v2101_v56, %v1967_v22  ;;  %v2015_v31 = vmul.f32 %v1995_v6, %v4824_v37 }
 0x228   : > { %v2128_v40 = vadd.f32 %v2102_v38, %v2015_v31  ;;  %v1780_v43 = vpop.f32.mrf.mxu3 }
 0x229   : > { %v1936_v36 = vrot.slane %v1780_v43, 7  ;;  %v4831_v43 = vld [vmem:[#allocation26_spill] sm:$0xff] }
 0x22a   : > { %v2191_v50 = vadd.f32 %v2190_v54, %v2128_v40  ;;  %v1913_v63 = vpop.f32.mrf.mxu0  ;;  %v2198_v61 = vpop.f32.mrf.mxu2 }
 0x22b   : > { %v1947_v41 = vsel %vm987_vm8, %v1935_v52, %v1936_v36  ;;  %v1985_v34 = vrot.slane %v1913_v63, 1  ;;  %v2106_v42 = vpop.f32.mrf.mxu1  ;;  %v4829_v52 = vld [vmem:[#allocation24_spill] sm:$0xff] }
 0x22c   : > { %2217 = vst [vmem:[%s4482_s22 + $0x48] sm:$0xff] %v2191_v50  ;;  %v1968_v23 = vmul.f32 %v1947_v41, %v4825_v45 }
 0x22d   : > { %v1994_v11 = vsel %vm1116_vm9, %v1984_v30, %v1985_v34  ;;  %v4830_v30 = vld [vmem:[#allocation25_spill] sm:$0xff] }
 0x22e   : > { %v2105_v4 = vadd.f32 %v2104_v1, %v1968_v23  ;;  %v2016_v27 = vmul.f32 %v1994_v11, %v4826_v53 }
 0x230   : > { %v2129_v58 = vadd.f32 %v2105_v4, %v2016_v27  ;;  %v1782_v29 = vpop.f32.mrf.mxu3 }
 0x231   : > { %v1937_v28 = vrot.slane %v1782_v29, 7 }
 0x232   : > { %v2194_v57 = vadd.f32 %v2193_v2, %v2129_v58  ;;  %v1916_v8 = vpop.f32.mrf.mxu0  ;;  %v2200_v50 = vpop.f32.mrf.mxu2 }
 0x233   : > { %v1946_v20 = vsel %vm987_vm8, %v1936_v36, %v1937_v28  ;;  %v1986_v26 = vrot.slane %v1916_v8, 1  ;;  %v2109_v60 = vpop.f32.mrf.mxu1 }
 0x234   : > { %2218 = vst [vmem:[%s4482_s22 + $0x50] sm:$0xff] %v2194_v57  ;;  %v1969_v0 = vmul.f32 %v1946_v20, %v4827_v32 }
 0x235   : > { %v1993_v13 = vsel %vm1116_vm9, %v1985_v34, %v1986_v26  ;;  %v4832_v34 = vld [vmem:[#allocation27_spill] sm:$0xff] }
 0x236   : > { %v2107_v51 = vadd.f32 %v2106_v42, %v1969_v0  ;;  %v2017_v56 = vmul.f32 %v1993_v13, %v4828_v48 }
 0x238   : > { %v2130_v15 = vadd.f32 %v2107_v51, %v2017_v56  ;;  %v1785_v5 = vpop.f32.mrf.mxu3 }
 0x239   : > { %v1938_v54 = vrot.slane %v1785_v5, 7 }
 0x23a   : > { %v2196_v55 = vadd.f32 %v2195_v7, %v2130_v15  ;;  %v1918_v33 = vpop.f32.mrf.mxu0  ;;  %v2203_v20 = vpop.f32.mrf.mxu2 }
 0x23b   : > { %v1945_v17 = vsel %vm987_vm8, %v1937_v28, %v1938_v54  ;;  %v1987_v12 = vrot.slane %v1918_v33, 1  ;;  %v2111_v6 = vpop.f32.mrf.mxu1 }
 0x23c   : > { %2219 = vst [vmem:[%s4482_s22 + $0x58] sm:$0xff] %v2196_v55  ;;  %v1970_v24 = vmul.f32 %v1945_v17, %v4829_v52 }
 0x23d   : > { %v1992_v16 = vsel %vm1116_vm9, %v1986_v26, %v1987_v12 }
 0x23e   : > { %v2110_v47 = vadd.f32 %v2109_v60, %v1970_v24  ;;  %v2018_v1 = vmul.f32 %v1992_v16, %v4830_v30 }
 0x240   : > { %v2131_v44 = vadd.f32 %v2110_v47, %v2018_v1  ;;  %v1787_v22 = vpop.f32.mrf.mxu3 }
 0x241   : > { %v1939_v38 = vrot.slane %v1787_v22, 7 }
 0x242   : > { %v2199_v37 = vadd.f32 %v2198_v61, %v2131_v44  ;;  %v1921_v31 = vpop.f32.mrf.mxu0 }
 0x243   : > { %v1944_v2 = vsel %vm987_vm8, %v1938_v54, %v1939_v38  ;;  %v1988_v40 = vrot.slane %v1921_v31, 1  ;;  %v2114_v27 = vpop.f32.mrf.mxu1 }
 0x244   : > { %2220 = vst [vmem:[%s4482_s22 + $0x60] sm:$0xff] %v2199_v37  ;;  %v1971_v36 = vmul.f32 %v1944_v2, %v4831_v43 }
 0x245   : > { %v1991_v63 = vsel %vm1116_vm9, %v1987_v12, %v1988_v40 }
 0x246   : > { %v2112_v41 = vadd.f32 %v2111_v6, %v1971_v36  ;;  %v2019_v45 = vmul.f32 %v1991_v63, %v4832_v34 }
 0x248   : > { %v2132_v23 = vadd.f32 %v2112_v41, %v2019_v45  ;;  %v1790_v11 = vpop.f32.mrf.mxu3 }
 0x249   : > { %v1940_v42 = vrot.slane %v1790_v11, 7 }
 0x24a   : > { %v2201_v4 = vadd.f32 %v2200_v50, %v2132_v23  ;;  %v1923_v53 = vpop.f32.mrf.mxu0 }
 0x24b   : > { %v1943_v58 = vsel %vm987_vm8, %v1939_v38, %v1940_v42  ;;  %v1989_v29 = vrot.slane %v1923_v53, 1  ;;  %v2116_v60 = vpop.f32.mrf.mxu1 }
 0x24c   : > { %2221 = vst [vmem:[%s4482_s22 + $0x68] sm:$0xff] %v2201_v4  ;;  %v1972_v28 = vmul.f32 %v1943_v58, %v4052_v62 }
 0x24d   : > { %v1990_v7 = vsel %vm1116_vm9, %v1988_v40, %v1989_v29  ;;  %v2005_v51 = vsel %vm1116_vm9, %v1989_v29, %v1974_v25 }
 0x24e   : > { %v2115_v57 = vadd.f32 %v2114_v27, %v1972_v28  ;;  %v2020_v8 = vmul.f32 %v1990_v7, %v4113_v9  ;;  %v2021_v21 = vmul.f32 %v2005_v51, %v4155_v59 }
 0x250   : > { %v2133_v26 = vadd.f32 %v2115_v57, %v2020_v8  ;;  %v1792_v32 = vpop.f32.mrf.mxu3 }
 0x251   : > { %v1941_v0 = vrot.slane %v1792_v32, 7 }
 0x252   : > { %v2204_v13 = vadd.f32 %v2203_v20, %v2133_v26 }
 0x253   : > { %v1942_v62 = vsel %vm987_vm8, %v1940_v42, %v1941_v0  ;;  %v1957_v9 = vsel %vm987_vm8, %v1941_v0, %v1926_v46  ;;  %v2205_v46 = vpop.f32.mrf.mxu2 }
 0x254   : > { %2222 = vst [vmem:[%s4482_s22 + $0x70] sm:$0xff] %v2204_v13  ;;  %v1958_v48 = vmul.f32 %v1957_v9, %v3652_v19  ;;  %v1973_v56 = vmul.f32 %v1942_v62, %v4150_v3 }
 0x256   : > { %v2080_v10 = vadd.f32 %v4457_v35, %v1958_v48  ;;  %v2117_v25 = vadd.f32 %v2116_v60, %v1973_v56 }
 0x258   : > { %v2119_v19 = vadd.f32 %v2080_v10, %v2006_v18  ;;  %v2134_v3 = vadd.f32 %v2117_v25, %v2021_v21 }
 0x25a   : > { %v2169_v15 = vadd.f32 %v4450_v14, %v2119_v19  ;;  %v2206_v5 = vadd.f32 %v2205_v46, %v2134_v3 }
 0x25c   : > { %2208 = vst [vmem:[%s4482_s22] sm:$0xff] %v2169_v15 }
 0x25d   : > { %2223 = vst [vmem:[%s4482_s22 + $0x78] sm:$0xff] %v2206_v5 }
 0x25e   : > { %2843 = shalt.err (!%p2840_p3)
}
 0x25f   : > { %s2881_s23 = smov 128   ;;  %s2882_s22 = smov 8  }
 0x260   : > { %2640 = dma.vmem_to_hbm [thread:$0]  (%p2971_p5), %s2238_s28, 2048, %s2240_s14, %s2225_s16, %s2881_s23, %s2881_s23, %s2882_s22  }
 0x261 PF: > { %p2646_p4 = scmp.ge.s32.totalorder %s2878_s12, 2  ;;  %s2254_s27 = sand.u32 1, %s2866_s30  }
 0x262   : > { %s2255_s29 = scalar_lea.sflag [#allocation3], %s2254_s27 }
 0x263   : > { %p2643_p7 = pnand %p2646_p4, %p2975_p6 }
 0x265   : > { %p2644_p8 = pneg %p2643_p7 }
 0x267   : > { %2861 = dma.done.wait (%p2644_p8), %s2255_s29, 2048  }
 0x268   : > { %2863 = vsyncadd (%p2644_p8), %s2255_s29, 4294965248  ;;  %p19_p9 = scmp.ge.s32.totalorder %s2958_s15, 4   ;;  %s4833_s30 = smov %s2870_s10 }
 0x269   : > { %s4834_s10 = smov %s2874_s11  ;;  %s4835_s11 = smov %s2969_s18 }
 0x26a   : > { %s4836_s12 = smov %s2958_s15  ;;  %21 = sbr.rel (!%p19_p9) target bundleno = 3 (0x3), region = 95 }
 0x26f   :  { %2261 = vsyncpa [#allocation3], 1 }
 0x270   :  { %2263 = vsyncpa [#allocation3 + $0x1], 1 }

</bundles_post_ra>
